<compile_context>
chip_gen: v7x
topology: tpu7x:2x2x1
jax: 0.10.0
libtpu: 0.0.40
codegen_flags: <defaults>
</compile_context>

<pallas_src>
import functools

import jax
import jax.numpy as jnp
from jax.experimental import pallas as pl
from jax.experimental.pallas import tpu as pltpu


def _spatial_linear_attention_kernel(x_ref, wqkv_ref, wout_ref, bout_ref, o_ref,
                                     *, heads, dim_head):
    """One (batch*frame) image per grid step.

    x_ref    : (1, C, N)      VMEM f32
    wqkv_ref : (3*H*dh, C)    VMEM bf16, resident across grid
    wout_ref : (C, H*dh)      VMEM bf16, resident (q-scale pre-folded)
    bout_ref : (C, 1)         VMEM f32, resident
    o_ref    : (1, C, N)      VMEM f32
    """
    hidden = heads * dim_head
    n = x_ref.shape[2]

    x = x_ref[0].astype(jnp.bfloat16)                                  # (C, N)

    # qkv 1x1-conv == channel matmul: single MXU contraction, bf16 in / f32 acc.
    qkv = jnp.dot(wqkv_ref[...], x,
                  preferred_element_type=jnp.float32)                  # (3*hidden, N)

    # Head split: rows are [q_h0..q_h{H-1} | k_h0.. | v_h0..]; these are
    # sublane-aligned slices + sublane-axis reshapes (no lane-masked extracts).
    q = qkv[0 * hidden:1 * hidden].reshape(heads, dim_head, n)         # (H, dh, N)
    k = qkv[1 * hidden:2 * hidden].reshape(heads, dim_head, n)         # (H, dh, N)
    v = qkv[2 * hidden:3 * hidden].reshape(heads, dim_head, n)         # (H, dh, N)

    # q: softmax over dim_head (torch dim=-2), kept in f32.
    q = q - jnp.max(q, axis=1, keepdims=True)
    q = jnp.exp(q)
    q = q * pl.reciprocal(jnp.sum(q, axis=1, keepdims=True), approx=True)

    # k: softmax over spatial axis (torch dim=-1), kept in f32.
    k = k - jnp.max(k, axis=2, keepdims=True)
    k = jnp.exp(k)
    k = k * pl.reciprocal(jnp.sum(k, axis=2, keepdims=True), approx=True)

    # context[h, d, e] = sum_n k[h, d, n] * v[h, e, n]   (heads batched on MXU)
    context = jnp.einsum('hdn,hen->hde',
                         k.astype(jnp.bfloat16), v.astype(jnp.bfloat16),
                         preferred_element_type=jnp.float32)           # (H, dh, dh)

    # out[h, e, n] = sum_d context[h, d, e] * q[h, d, n]  (heads batched on MXU)
    out = jnp.einsum('hde,hdn->hen',
                     context.astype(jnp.bfloat16), q.astype(jnp.bfloat16),
                     preferred_element_type=jnp.float32)               # (H, dh, N)

    # Merge heads ('b h c (x y) -> b (h c) x y') and apply the output 1x1 conv.
    out = out.reshape(hidden, n).astype(jnp.bfloat16)                  # (hidden, N)
    y = jnp.dot(wout_ref[...], out,
                preferred_element_type=jnp.float32)                    # (C, N)
    o_ref[0] = (y + bout_ref[...]).astype(o_ref.dtype)                 # lane-dense store


def spatial_linear_attention_forward(x, w_qkv, w_out, b_out, *, heads, dim_head):
    """Forward of SpatialLinearAttention.

    x     : (B, C, F, H, W) f32
    w_qkv : (3*heads*dim_head, C)  -- Conv2d(dim, 3*hidden, 1, bias=False).weight[..., 0, 0]
    w_out : (C, heads*dim_head)    -- Conv2d(hidden, dim, 1).weight[..., 0, 0]
    b_out : (C,)                   -- Conv2d(hidden, dim, 1).bias
    returns (B, C, F, H, W)
    """
    B, C, F, H, W = x.shape
    hidden = heads * dim_head
    N = H * W
    scale = dim_head ** (-0.5)
    assert w_qkv.shape == (3 * hidden, C)
    assert w_out.shape == (C, hidden)
    assert b_out.shape == (C,)

    # 'b c f h w -> (b f) c (h w)'  (host-side layout plumbing only)
    x_flat = x.transpose(0, 2, 1, 3, 4).reshape(B * F, C, N)

    # One-time parameter prep: bf16 weights for the MXU; fold the post-softmax
    # q scale into the output projection (scalar commutes with the matmul).
    w_qkv_p = w_qkv.astype(jnp.bfloat16)
    w_out_p = (w_out * scale).astype(jnp.bfloat16)
    b_out_p = b_out.reshape(C, 1).astype(jnp.float32)

    kernel = functools.partial(_spatial_linear_attention_kernel,
                               heads=heads, dim_head=dim_head)

    y_flat = pl.pallas_call(
        kernel,
        out_shape=jax.ShapeDtypeStruct((B * F, C, N), x.dtype),
        grid_spec=pltpu.PrefetchScalarGridSpec(
            num_scalar_prefetch=0,
            grid=(B * F,),
            in_specs=[
                pl.BlockSpec((1, C, N), lambda b: (b, 0, 0)),
                pl.BlockSpec((3 * hidden, C), lambda b: (0, 0)),
                pl.BlockSpec((C, hidden), lambda b: (0, 0)),
                pl.BlockSpec((C, 1), lambda b: (0, 0)),
            ],
            out_specs=pl.BlockSpec((1, C, N), lambda b: (b, 0, 0)),
        ),
        compiler_params=pltpu.CompilerParams(
            dimension_semantics=("parallel",)),
    )(x_flat, w_qkv_p, w_out_p, b_out_p)

    # '(b f) c (h w) -> b c f h w'
    return y_flat.reshape(B, F, C, H, W).transpose(0, 2, 1, 3, 4)


def spatial_linear_attention_reference(x, w_qkv, w_out, b_out, *, heads, dim_head):
    """Pure-JAX f32 mirror of the PyTorch SpatialLinearAttention.forward."""
    B, C, F, H, W = x.shape
    hidden = heads * dim_head
    N = H * W
    scale = dim_head ** (-0.5)

    xf = x.transpose(0, 2, 1, 3, 4).reshape(B * F, C, N)               # (BF, C, N)
    qkv = jnp.einsum('oc,bcn->bon', w_qkv, xf)                         # (BF, 3*hidden, N)
    q, k, v = jnp.split(qkv, 3, axis=1)

    def split_heads(t):  # 'b (h c) n -> b h c n'
        return t.reshape(B * F, heads, dim_head, N)

    q, k, v = split_heads(q), split_heads(k), split_heads(v)
    q = jax.nn.softmax(q, axis=-2)
    k = jax.nn.softmax(k, axis=-1)
    q = q * scale
    context = jnp.einsum('bhdn,bhen->bhde', k, v)
    out = jnp.einsum('bhde,bhdn->bhen', context, q)
    out = out.reshape(B * F, hidden, N)                                # 'b h c n -> b (h c) n'
    y = jnp.einsum('oc,bcn->bon', w_out, out) + b_out.reshape(1, C, 1)
    return y.reshape(B, F, C, H, W).transpose(0, 2, 1, 3, 4)


if __name__ == "__main__":
    # Module defaults: heads=4, dim_head=32.  Small video: B=2, dim=32, F=4, 16x16 spatial.
    dim, heads, dim_head = 32, 4, 32
    hidden = heads * dim_head          # 128
    B, F, H, W = 2, 4, 16, 16          # N = 256

    key = jax.random.PRNGKey(0)
    kx, kq, kw, kb = jax.random.split(key, 4)

    x = jax.random.normal(kx, (B, dim, F, H, W), dtype=jnp.float32)
    w_qkv = jax.random.normal(kq, (3 * hidden, dim), dtype=jnp.float32) * (dim ** -0.5)
    w_out = jax.random.normal(kw, (dim, hidden), dtype=jnp.float32) * (hidden ** -0.5)
    b_out = jax.random.normal(kb, (dim,), dtype=jnp.float32) * 0.1

    y = spatial_linear_attention_forward(x, w_qkv, w_out, b_out,
                                         heads=heads, dim_head=dim_head)
    y = jax.block_until_ready(y)

    y_ref = spatial_linear_attention_reference(x, w_qkv, w_out, b_out,
                                               heads=heads, dim_head=dim_head)
    assert y.shape == (B, dim, F, H, W)
    max_err = float(jnp.max(jnp.abs(y - y_ref)))
    # bf16 MXU inputs + approx reciprocal vs f32 reference -> loose tolerance.
    assert max_err < 5e-2, f"mismatch vs reference: max abs err = {max_err}"

    print("KERNEL_OK")
</pallas_src>

<mosaic_0001>
module attributes {stable_mosaic.version = 11 : i64} {
  func.func @_spatial_linear_attention_kernel(%arg0: i32, %arg1: memref<1x32x256xf32, #tpu.memory_space<vmem>>, %arg2: memref<384x32xbf16, #tpu.memory_space<vmem>>, %arg3: memref<32x128xbf16, #tpu.memory_space<vmem>>, %arg4: memref<32x1xf32, #tpu.memory_space<vmem>>, %arg5: memref<1x32x256xf32, #tpu.memory_space<vmem>>) attributes {dimension_semantics = [#tpu.dimension_semantics<parallel>], iteration_bounds = array<i64: 8>, scalar_prefetch = 0 : i64, scratch_operands = 0 : i64, tpu.core_type = #tpu.core_type<tc>, window_params = [{transform_indices = @transform_0, window_bounds = array<i64: 1, 32, 256>}, {pipeline_mode = #tpu.pipeline_mode<synchronous>, transform_indices = @transform_1, window_bounds = array<i64: 384, 32>}, {pipeline_mode = #tpu.pipeline_mode<synchronous>, transform_indices = @transform_2, window_bounds = array<i64: 32, 128>}, {pipeline_mode = #tpu.pipeline_mode<synchronous>, transform_indices = @transform_3, window_bounds = array<i64: 32, 1>}, {transform_indices = @transform_4, window_bounds = array<i64: 1, 32, 256>}]} {
    %c0 = arith.constant 0 : index
    %c0_0 = arith.constant 0 : index
    %c0_1 = arith.constant 0 : index
    %0 = vector.load %arg1[%c0, %c0_0, %c0_1] : memref<1x32x256xf32, #tpu.memory_space<vmem>>, vector<1x32x256xf32>
    %1 = vector.shape_cast %0 : vector<1x32x256xf32> to vector<32x256xf32>
    %2 = arith.truncf %1 : vector<32x256xf32> to vector<32x256xbf16>
    %c0_2 = arith.constant 0 : index
    %c0_3 = arith.constant 0 : index
    %3 = vector.load %arg2[%c0_2, %c0_3] : memref<384x32xbf16, #tpu.memory_space<vmem>>, vector<384x32xbf16>
    %cst = arith.constant dense<0.000000e+00> : vector<384x256xf32>
    %4 = tpu.matmul %3, %2, %cst {dimension_numbers = #tpu.dot_dimension_numbers<[1], [0], [0], [1], [0, 0, 1, 1], [], []>} : vector<384x32xbf16>, vector<32x256xbf16>, vector<384x256xf32> -> vector<384x256xf32>
    %5 = vector.extract_strided_slice %4 {offsets = [0, 0], sizes = [128, 256], strides = [1, 1]} : vector<384x256xf32> to vector<128x256xf32>
    %6 = vector.shape_cast %5 : vector<128x256xf32> to vector<4x32x256xf32>
    %7 = vector.extract_strided_slice %4 {offsets = [128, 0], sizes = [128, 256], strides = [1, 1]} : vector<384x256xf32> to vector<128x256xf32>
    %8 = vector.shape_cast %7 : vector<128x256xf32> to vector<4x32x256xf32>
    %9 = vector.extract_strided_slice %4 {offsets = [256, 0], sizes = [128, 256], strides = [1, 1]} : vector<384x256xf32> to vector<128x256xf32>
    %10 = vector.shape_cast %9 : vector<128x256xf32> to vector<4x32x256xf32>
    %cst_4 = arith.constant dense<0xFF800000> : vector<4x256xf32>
    %11 = vector.multi_reduction <maximumf>, %6, %cst_4 [1] : vector<4x32x256xf32> to vector<4x256xf32>
    %12 = vector.shape_cast %11 : vector<4x256xf32> to vector<4x1x256xf32>
    %13 = vector.broadcast %12 : vector<4x1x256xf32> to vector<4x32x256xf32>
    %14 = arith.subf %6, %13 : vector<4x32x256xf32>
    %15 = math.exp %14 : vector<4x32x256xf32>
    %cst_5 = arith.constant dense<0.000000e+00> : vector<4x256xf32>
    %16 = vector.multi_reduction <add>, %15, %cst_5 [1] : vector<4x32x256xf32> to vector<4x256xf32>
    %17 = vector.shape_cast %16 : vector<4x256xf32> to vector<4x1x256xf32>
    %18 = tpu.reciprocal %17 {approx = true} : vector<4x1x256xf32> -> vector<4x1x256xf32>
    %19 = vector.broadcast %18 : vector<4x1x256xf32> to vector<4x32x256xf32>
    %20 = arith.mulf %15, %19 : vector<4x32x256xf32>
    %cst_6 = arith.constant dense<0xFF800000> : vector<4x32xf32>
    %21 = vector.multi_reduction <maximumf>, %8, %cst_6 [2] : vector<4x32x256xf32> to vector<4x32xf32>
    %22 = vector.shape_cast %21 : vector<4x32xf32> to vector<4x32x1xf32>
    %23 = vector.broadcast %22 : vector<4x32x1xf32> to vector<4x32x256xf32>
    %24 = arith.subf %8, %23 : vector<4x32x256xf32>
    %25 = math.exp %24 : vector<4x32x256xf32>
    %cst_7 = arith.constant dense<0.000000e+00> : vector<4x32xf32>
    %26 = vector.multi_reduction <add>, %25, %cst_7 [2] : vector<4x32x256xf32> to vector<4x32xf32>
    %27 = vector.shape_cast %26 : vector<4x32xf32> to vector<4x32x1xf32>
    %28 = tpu.reciprocal %27 {approx = true} : vector<4x32x1xf32> -> vector<4x32x1xf32>
    %29 = vector.broadcast %28 : vector<4x32x1xf32> to vector<4x32x256xf32>
    %30 = arith.mulf %25, %29 : vector<4x32x256xf32>
    %31 = arith.truncf %30 : vector<4x32x256xf32> to vector<4x32x256xbf16>
    %32 = arith.truncf %10 : vector<4x32x256xf32> to vector<4x32x256xbf16>
    "tpu.trace_start"() <{level = 10 : i32, message = "hdn,hen->hde"}> : () -> ()
    %cst_8 = arith.constant dense<0.000000e+00> : vector<4x32x32xf32>
    %33 = tpu.matmul %31, %32, %cst_8 {dimension_numbers = #tpu.dot_dimension_numbers<[2], [2], [1], [1], [0, 0, 0, 1, 1, 1], [0], [0]>} : vector<4x32x256xbf16>, vector<4x32x256xbf16>, vector<4x32x32xf32> -> vector<4x32x32xf32>
    "tpu.trace_stop"() : () -> ()
    %34 = arith.truncf %33 : vector<4x32x32xf32> to vector<4x32x32xbf16>
    %35 = arith.truncf %20 : vector<4x32x256xf32> to vector<4x32x256xbf16>
    "tpu.trace_start"() <{level = 10 : i32, message = "hde,hdn->hen"}> : () -> ()
    %cst_9 = arith.constant dense<0.000000e+00> : vector<4x32x256xf32>
    %36 = tpu.matmul %34, %35, %cst_9 {dimension_numbers = #tpu.dot_dimension_numbers<[1], [1], [2], [2], [0, 0, 0, 2, 1, 2], [0], [0]>} : vector<4x32x32xbf16>, vector<4x32x256xbf16>, vector<4x32x256xf32> -> vector<4x32x256xf32>
    "tpu.trace_stop"() : () -> ()
    %37 = vector.shape_cast %36 : vector<4x32x256xf32> to vector<128x256xf32>
    %38 = arith.truncf %37 : vector<128x256xf32> to vector<128x256xbf16>
    %c0_10 = arith.constant 0 : index
    %c0_11 = arith.constant 0 : index
    %39 = vector.load %arg3[%c0_10, %c0_11] : memref<32x128xbf16, #tpu.memory_space<vmem>>, vector<32x128xbf16>
    %cst_12 = arith.constant dense<0.000000e+00> : vector<32x256xf32>
    %40 = tpu.matmul %39, %38, %cst_12 {dimension_numbers = #tpu.dot_dimension_numbers<[1], [0], [0], [1], [0, 0, 1, 1], [], []>} : vector<32x128xbf16>, vector<128x256xbf16>, vector<32x256xf32> -> vector<32x256xf32>
    %c0_13 = arith.constant 0 : index
    %c0_14 = arith.constant 0 : index
    %41 = vector.load %arg4[%c0_13, %c0_14] : memref<32x1xf32, #tpu.memory_space<vmem>>, vector<32x1xf32>
    %42 = vector.broadcast %41 : vector<32x1xf32> to vector<32x256xf32>
    %43 = arith.addf %40, %42 : vector<32x256xf32>
    %c0_15 = arith.constant 0 : index
    %c0_16 = arith.constant 0 : index
    %c0_17 = arith.constant 0 : index
    %44 = vector.load %arg5[%c0_15, %c0_16, %c0_17] : memref<1x32x256xf32, #tpu.memory_space<vmem>>, vector<1x32x256xf32>
    %45 = vector.shape_cast %44 : vector<1x32x256xf32> to vector<32x256xf32>
    %46 = vector.shape_cast %43 : vector<32x256xf32> to vector<1x32x256xf32>
    tpu.vector_store %arg5[%c0_15, %c0_16, %c0_17], %46 {strides = array<i32>} : memref<1x32x256xf32, #tpu.memory_space<vmem>>, vector<1x32x256xf32>,
    return
  }
  func.func @transform_0(%arg0: i32) -> (i32, i32, i32) {
    %c0_i32 = arith.constant 0 : i32
    %c0_i32_0 = arith.constant 0 : i32
    %c0_i32_1 = arith.constant 0 : i32
    return %arg0, %c0_i32, %c0_i32_0 : i32, i32, i32
  }
  func.func @transform_1(%arg0: i32) -> (i32, i32) {
    %c0_i32 = arith.constant 0 : i32
    %c0_i32_0 = arith.constant 0 : i32
    %c0_i32_1 = arith.constant 0 : i32
    return %c0_i32, %c0_i32_0 : i32, i32
  }
  func.func @transform_2(%arg0: i32) -> (i32, i32) {
    %c0_i32 = arith.constant 0 : i32
    %c0_i32_0 = arith.constant 0 : i32
    %c0_i32_1 = arith.constant 0 : i32
    return %c0_i32, %c0_i32_0 : i32, i32
  }
  func.func @transform_3(%arg0: i32) -> (i32, i32) {
    %c0_i32 = arith.constant 0 : i32
    %c0_i32_0 = arith.constant 0 : i32
    %c0_i32_1 = arith.constant 0 : i32
    return %c0_i32, %c0_i32_0 : i32, i32
  }
  func.func @transform_4(%arg0: i32) -> (i32, i32, i32) {
    %c0_i32 = arith.constant 0 : i32
    %c0_i32_0 = arith.constant 0 : i32
    %c0_i32_1 = arith.constant 0 : i32
    return %arg0, %c0_i32, %c0_i32_0 : i32, i32, i32
  }
}

</mosaic_0001>

<bundles_post_ra>
// kernel: tpu_custom_call.1
= control target key start
LH: loop header
LB: loop body
LE: loop exit
PB: predicated region body
PF: predicated region fallthrough
CT: control target
= control target key end

     0   :  { %9 = vsyncpa [#allocation3], 0  ;;  %s3539_s0 = inlined_call_operand.hbm [shape: f32[8,32,256], index: 0, kind: input, shape index: {}]   ;;  %s3540_s1 = inlined_call_operand.vmem [shape: bf16[384,32], index: 1, kind: input, shape index: {}]   ;;  %s3541_s2 = inlined_call_operand.vmem [shape: bf16[32,128], index: 2, kind: input, shape index: {}]   ;;  %s3542_s3 = inlined_call_operand.vmem [shape: f32[32,1], index: 3, kind: input, shape index: {}]   ;;  %s3543_s4 = inlined_call_operand.hbm [shape: f32[8,32,256], index: 4, kind: output, shape index: {}]  }
   0x1   :  { %11 = vsyncpa [#allocation3 + $0x1], 0 }
   0x2   :  { %12 = vsyncpa [#allocation4], 0 }
   0x3   :  { %14 = vsyncpa [#allocation4 + $0x1], 0  ;;  %s2482_s15 = smov 0   ;;  %s2484_s16 = smov 0  }
   0x4   :  { %s2486_s17 = smov 0   ;;  %s2488_s18 = smov 0  }
   0x5 LB: > { %s2503_s19 = sadd.s32 4294967295, %s2448_s18   ;;  %s2019_s20 = sadd.s32 4294967294, %s2448_s18   ;;  %s2448_s18 = sphi %s2488_s18, %s3693_s18   ;;  %s2444_s17 = sphi %s2486_s17, %s3692_s17   ;;  %s2440_s16 = sphi %s2484_s16, %s3691_s16   ;;  %s2436_s15 = sphi %s2482_s15, %s3690_s15  }
   0x6   : > { %s2507_s21 = sadd.s32 1, %s2448_s18   ;;  %s27_s22 = sadd.s32 1, %s2444_s17 }
   0x7   : > { %s24_s23 = ssub.s32 %s2448_s18, %s2507_s21  ;;  %p34_p0 = scmp.ne.s32.totalorder %s2444_s17, %s2440_s16 }
   0x8   : > { %p25_p1 = scmp.eq.s32.totalorder %s24_s23, 0  ;;  %p35_p2 = scmp.eq.s32.totalorder %s2448_s18, 0 }
   0x9   : > { %p40_p3 = scmp.ne.s32.totalorder %s2440_s16, %s2436_s15  ;;  %p41_p4 = scmp.eq.s32.totalorder %s2503_s19, 0 }
   0xa   : > { %s2519_s24 = scalar_select %p25_p1, %s2444_s17, %s27_s22  }
   0xb   : > { %p2521_p5 = por %p35_p2, %p34_p0  ;;  %p2525_p6 = por %p41_p4, %p40_p3 }
   0xc   : > { %p127_p7 = scmp.eq.s32.totalorder %s2503_s19, 7  ;;  %p133_p8 = scmp.eq.s32.totalorder %s2019_s20, 7 }
   0xd   : > { %p2109_p9 = scmp.lt.s32.totalorder %s2448_s18, 8  ;;  %s162_s29 = sand.u32 1, %s2444_s17  }
   0xe   : > { %p2531_p10 = por %p127_p7, %p34_p0  ;;  %p2535_p11 = por %p133_p8, %p40_p3 }
   0xf   : > { %s2091_s30 = sshll.u32 %s2448_s18, 10  ;;  %s2022_s5 = sshll.u32 %s162_s29, 6 }
  0x10   : > { %s3585_s27 = scalar_select %p2531_p10, 1, 0 }
  0x11   : > { %s3586_s28 = scalar_select %p2535_p11, 1, 0 }
  0x12   : > { %s2544_s8 = scalar_lea.hbm %s3539_s0, %s2091_s30  ;;  %s166_s9 = scalar_lea.vmem [#allocation2], %s2022_s5 }
  0x13   : > { %s173_s10 = sshll.u32 %s166_s9, 4  ;;  %p2548_p12 = pnand %p2109_p9, %p2521_p5  ;;  %s2552_s10 = int_to_ptr.vmem [resolvable:$true] %s173_s10 }
  0x14   : > { %s2554_s12 = scalar_lea.sflag [#allocation3], %s162_s29  ;;  %s2352_s13 = scalar_lea.hbm %s2544_s8, 1024 }
  0x15   : > { %p2353_p13 = scmp.ne.s32.totalorder %s2544_s8, %s2352_s13  ;;  %p2354_p0 = pneg %p2548_p12 }
  0x16   : > { %s2357_s22 = scalar_lea.hbm %s3539_s0, 8192  ;;  %p2358_p3 = scmp.lt.u32.totalorder %s2544_s8, %s3539_s0 }
  0x17   : > { %p2355_p1 = pnand %p2354_p0, %p2353_p13  ;;  %p2359_p4 = scmp.lt.u32.totalorder %s2357_s22, %s2352_s13 }
  0x18   : > { %p2361_p7 = scmp.lt.u32.totalorder %s2352_s13, %s2544_s8 }
  0x19   : > { %p2356_p2 = pneg %p2355_p1  ;;  %p2360_p5 = por %p2359_p4, %p2358_p3 }
  0x1b   : > { %p2362_p8 = por %p2361_p7, %p2360_p5 }
  0x1d   : > { %p2363_p9 = pnand %p2362_p8, %p2356_p2 }
  0x1f   : > { %2366 = shalt.err (!%p2363_p9)
}
  0x20   : > { %s2367_s29 = scalar_lea.vmem %s2552_s10, 1024  ;;  %s2450_s30 = smov [#allocation2]  }
  0x21   : > { %p2368_p13 = scmp.ne.s32.totalorder %s2552_s10, %s2367_s29  ;;  %s2372_s5 = sshll.u32 %s2450_s30, 4  ;;  %s2373_s5 = int_to_ptr.vmem [resolvable:$false] %s2372_s5 }
  0x22   : > { %s2374_s6 = scalar_lea.vmem %s2373_s5, 2048  ;;  %p2375_p10 = scmp.lt.s32.totalorder %s2552_s10, %s2373_s5 }
  0x23   : > { %p2370_p1 = pnand %p2368_p13, %p2354_p0  ;;  %p2376_p3 = scmp.lt.s32.totalorder %s2374_s6, %s2367_s29 }
  0x25   : > { %p2371_p11 = pneg %p2370_p1  ;;  %p2377_p4 = por %p2376_p3, %p2375_p10 }
  0x27   : > { %p2378_p5 = pnand %p2377_p4, %p2371_p11 }
  0x29   : > { %2381 = shalt.err (!%p2378_p5)
}
  0x2a   : > { %s2451_s7 = smov 256   ;;  %s2452_s9 = smov 16  }
  0x2b   : > { %2104 = dma.hbm_to_vmem [thread:$0]  (!%p2548_p12), %s2544_s8, 1024, %s2552_s10, %s2554_s12, %s2451_s7, %s2451_s7, %s2452_s9  }
  0x2c   : > { %p2025_p0 = scmp.ge.s32.totalorder %s2448_s18, 1  ;;  %p181_p2 = scmp.lt.s32.totalorder %s2448_s18, 9 }
  0x2e   : > { %p182_p7 = pnand %p2025_p0, %p181_p2 }
  0x30   : > { %185 = sbr.rel (%p182_p7) target bundleno = 1513 (0x5e9), region = 36 }
  0x37   : > { %s2585_s13 = sand.u32 1, %s2440_s16  }
  0x38   : > { %s2026_s14 = sshll.u32 %s2585_s13, 6  ;;  %s188_s20 = scalar_lea.sflag [#allocation3], %s2585_s13 }
  0x39   : > { %s191_s22 = scalar_lea.vmem [#allocation2], %s2026_s14 }
  0x3a   : > { %2427 = dma.done.wait (%p2525_p6), %s188_s20, 1024  }
  0x3b   : > { %2429 = vsyncadd (%p2525_p6), %s188_s20, 4294966272  ;;  %v3545_v0 = vmov 0   ;;  %v218_v1 = vld [vmem:[%s191_s22 + $0x8] sm:$0xff]  ;;  %v220_v2 = vld [vmem:[%s191_s22 + $0x18] sm:$0xff]  ;;  %vm397_vm0 = vcmask 261120   ;;  %s215_s26 = scalar_lea.vmem [#allocation5], %s2026_s14 }
  0x3c   : > { %502 = vmatprep.mubr.bf16.mxu0 %v3545_v0  ;;  %722 = vmatprep.mubr.bf16.mxu1 %v3545_v0  ;;  %v217_v3 = vld [vmem:[%s191_s22] sm:$0xff]  ;;  %v226_v4 = vpack.c.bf16 %v220_v2, %v218_v1  ;;  %v219_v5 = vld [vmem:[%s191_s22 + $0x10] sm:$0xff]  ;;  %v222_v6 = vld [vmem:[%s191_s22 + $0x28] sm:$0xff]  ;;  %s1946_s8 = sshll.u32 %s215_s26, 4  ;;  %s2092_s10 = sshll.u32 %s2503_s19, 10  ;;  %s3491_s8 = int_to_ptr.vmem [resolvable:$true] %s1946_s8 }
  0x3d   : > { %v224_v7 = vld [vmem:[%s191_s22 + $0x38] sm:$0xff]  ;;  %v225_v8 = vpack.c.bf16 %v219_v5, %v217_v3  ;;  %v221_v10 = vld [vmem:[%s191_s22 + $0x20] sm:$0xff]  ;;  %v223_v11 = vld [vmem:[%s191_s22 + $0x30] sm:$0xff]  ;;  %s3496_s12 = scalar_lea.hbm %s3543_s4, %s2092_s10  ;;  %s1933_s19 = scalar_lea.sflag [#allocation4], %s2585_s13 }
  0x3e   : > { %v228_v9 = vpack.c.bf16 %v224_v7, %v222_v6  ;;  %470 = vmatprep.subr.bf16.mxu0 %v226_v4  ;;  %2093 = vmatprep.subr.bf16.mxu1 %v226_v4  ;;  %v227_v12 = vpack.c.bf16 %v223_v11, %v221_v10  ;;  %v2150_v13 = vld [vmem:[%s3540_s1] sm:$0xff]   ;;  %v2151_v14 = vld [vmem:[%s3540_s1 + $0x8] sm:$0xff]   ;;  %v2152_v15 = vld [vmem:[%s3540_s1 + $0x10] sm:$0xff]   ;;  %s2382_s23 = scalar_lea.vmem %s3491_s8, 1024  ;;  %p3688_p10 = scmp.ne.s32.totalorder %s3585_s27, 0 }
  0x3f   : > { %471 = vmatpush1.bf16.msra.mxu0 %v225_v8  ;;  %2095 = vmatpush1.bf16.msra.mxu1 %v225_v8  ;;  %v2153_v16 = vld [vmem:[%s3540_s1 + $0x18] sm:$0xff]   ;;  %v2154_v17 = vld [vmem:[%s3540_s1 + $0x20] sm:$0xff]   ;;  %v2155_v18 = vld [vmem:[%s3540_s1 + $0x28] sm:$0xff]   ;;  %p2383_p6 = scmp.ne.s32.totalorder %s3491_s8, %s2382_s23  ;;  %s2454_s25 = smov [#allocation5]  }
  0x40   : > { %472 = vmatprep.subr.bf16.mxu0 %v228_v9  ;;  %2094 = vmatprep.subr.bf16.mxu1 %v228_v9  ;;  %v2156_v19 = vld [vmem:[%s3540_s1 + $0x30] sm:$0xff]   ;;  %v2157_v20 = vld [vmem:[%s3540_s1 + $0x38] sm:$0xff]   ;;  %v2158_v21 = vld [vmem:[%s3540_s1 + $0x40] sm:$0xff]   ;;  %s2386_s29 = sshll.u32 %s2454_s25, 4  ;;  %s2387_s29 = int_to_ptr.vmem [resolvable:$false] %s2386_s29 }
  0x41   : > { %v2159_v22 = vld [vmem:[%s3540_s1 + $0x48] sm:$0xff]   ;;  %v2160_v23 = vld [vmem:[%s3540_s1 + $0x50] sm:$0xff]   ;;  %v2161_v24 = vld [vmem:[%s3540_s1 + $0x58] sm:$0xff]   ;;  %p2384_p11 = pnand %p2383_p6, %p3688_p10  ;;  %s2388_s30 = scalar_lea.vmem %s2387_s29, 2048 }
  0x42   : > { %v2162_v25 = vld [vmem:[%s3540_s1 + $0x60] sm:$0xff]   ;;  %v2163_v26 = vld [vmem:[%s3540_s1 + $0x68] sm:$0xff]   ;;  %v2164_v27 = vld [vmem:[%s3540_s1 + $0x70] sm:$0xff]   ;;  %p2389_p8 = scmp.lt.s32.totalorder %s3491_s8, %s2387_s29  ;;  %p2390_p9 = scmp.lt.s32.totalorder %s2388_s30, %s2382_s23 }
  0x43   : > { %473 = vmatpush1.bf16.msra.mxu0 %v227_v12  ;;  %2096 = vmatpush1.bf16.msra.mxu1 %v227_v12  ;;  %v2165_v28 = vld [vmem:[%s3540_s1 + $0x78] sm:$0xff]   ;;  %v2166_v29 = vld [vmem:[%s3540_s1 + $0x80] sm:$0xff]   ;;  %v2172_v31 = vld [vmem:[%s3540_s1 + $0xb0] sm:$0xff]   ;;  %p2385_p12 = pneg %p2384_p11 }
  0x44   : > { %v2167_v37 = vld [vmem:[%s3540_s1 + $0x88] sm:$0xff]   ;;  %v2173_v38 = vld [vmem:[%s3540_s1 + $0xb8] sm:$0xff]   ;;  %v2168_v47 = vld [vmem:[%s3540_s1 + $0x90] sm:$0xff]   ;;  %p2391_p13 = por %p2390_p9, %p2389_p8 }
  0x45   : > { %v2169_v62 = vld [vmem:[%s3540_s1 + $0x98] sm:$0xff]  }
  0x46   : > { %2052 = vmatmul.mubr.msk.bf16.vlgmr.msra.gmra.mrb[0].mxu0 %vm397_vm0, %v2150_v13  ;;  %2074 = vmatmul.mubr.msk.bf16.vlgmr.msra.gmra.mrb[0].mxu1 %vm397_vm0, %v2172_v31  ;;  %p2392_p1 = pnand %p2391_p13, %p2385_p12 }
  0x47   : > { %512 = vmatprep.mubr.bf16.mxu0 %v3545_v0  ;;  %732 = vmatprep.mubr.bf16.mxu1 %v3545_v0 }
  0x4e   : > { %2053 = vmatmul.mubr.msk.bf16.gmra.mrb[4].mxu0 %vm397_vm0, %v2151_v14  ;;  %2075 = vmatmul.mubr.msk.bf16.gmra.mrb[4].mxu1 %vm397_vm0, %v2173_v38 }
  0x4f   : > { %522 = vmatprep.mubr.bf16.mxu0 %v3545_v0 }
  0x56   : > { %2054 = vmatmul.mubr.msk.bf16.gmra.mrb[8].mxu0 %vm397_vm0, %v2152_v15 }
  0x57   : > { %532 = vmatprep.mubr.bf16.mxu0 %v3545_v0 }
  0x5e   : > { %2055 = vmatmul.mubr.msk.bf16.gmra.mrb[12].mxu0 %vm397_vm0, %v2153_v16 }
  0x5f   : > { %542 = vmatprep.mubr.bf16.mxu0 %v3545_v0 }
  0x66   : > { %2056 = vmatmul.mubr.msk.bf16.gmra.mrb[16].mxu0 %vm397_vm0, %v2154_v17 }
  0x67   : > { %552 = vmatprep.mubr.bf16.mxu0 %v3545_v0 }
  0x6e   : > { %2057 = vmatmul.mubr.msk.bf16.gmra.mrb[20].mxu0 %vm397_vm0, %v2155_v18 }
  0x6f   : > { %562 = vmatprep.mubr.bf16.mxu0 %v3545_v0 }
  0x76   : > { %2058 = vmatmul.mubr.msk.bf16.gmra.mrb[24].mxu0 %vm397_vm0, %v2156_v19 }
  0x77   : > { %572 = vmatprep.mubr.bf16.mxu0 %v3545_v0 }
  0x7e   : > { %2059 = vmatmul.mubr.msk.bf16.gmra.mrb[28].mxu0 %vm397_vm0, %v2157_v20 }
  0x7f   : > { %582 = vmatprep.mubr.bf16.mxu0 %v3545_v0 }
  0x86   : > { %2060 = vmatmul.mubr.msk.bf16.gmra.mrb[32].mxu0 %vm397_vm0, %v2158_v21  ;;  %v2170_v21 = vld [vmem:[%s3540_s1 + $0xa0] sm:$0xff]  }
  0x87   : > { %592 = vmatprep.mubr.bf16.mxu0 %v3545_v0 }
  0x8e   : > { %2061 = vmatmul.mubr.msk.bf16.gmra.mrb[36].mxu0 %vm397_vm0, %v2159_v22 }
  0x8f   : > { %602 = vmatprep.mubr.bf16.mxu0 %v3545_v0 }
  0x96   : > { %2062 = vmatmul.mubr.msk.bf16.gmra.mrb[40].mxu0 %vm397_vm0, %v2160_v23 }
  0x97   : > { %612 = vmatprep.mubr.bf16.mxu0 %v3545_v0 }
  0x9e   : > { %2063 = vmatmul.mubr.msk.bf16.gmra.mrb[44].mxu0 %vm397_vm0, %v2161_v24 }
  0x9f   : > { %622 = vmatprep.mubr.bf16.mxu0 %v3545_v0 }
  0xa6   : > { %2064 = vmatmul.mubr.msk.bf16.gmra.mrb[48].mxu0 %vm397_vm0, %v2162_v25 }
  0xa7   : > { %632 = vmatprep.mubr.bf16.mxu0 %v3545_v0 }
  0xae   : > { %2065 = vmatmul.mubr.msk.bf16.gmra.mrb[52].mxu0 %vm397_vm0, %v2163_v26 }
  0xaf   : > { %642 = vmatprep.mubr.bf16.mxu0 %v3545_v0 }
  0xb6   : > { %2066 = vmatmul.mubr.msk.bf16.gmra.mrb[56].mxu0 %vm397_vm0, %v2164_v27 }
  0xb7   : > { %652 = vmatprep.mubr.bf16.mxu0 %v3545_v0 }
  0xbe   : > { %2067 = vmatmul.mubr.msk.bf16.gmra.mrb[60].mxu0 %vm397_vm0, %v2165_v28 }
  0xbf   : > { %662 = vmatprep.mubr.bf16.mxu0 %v3545_v0 }
  0xc6   : > { %2068 = vmatmul.mubr.msk.bf16.gmra.mrb[64].mxu0 %vm397_vm0, %v2166_v29 }
  0xc7   : > { %672 = vmatprep.mubr.bf16.mxu0 %v3545_v0 }
  0xce   : > { %2069 = vmatmul.mubr.msk.bf16.gmra.mrb[68].mxu0 %vm397_vm0, %v2167_v37 }
  0xcf   : > { %682 = vmatprep.mubr.bf16.mxu0 %v3545_v0 }
  0xd6   : > { %2070 = vmatmul.mubr.msk.bf16.gmra.mrb[72].mxu0 %vm397_vm0, %v2168_v47 }
  0xd7   : > { %692 = vmatprep.mubr.bf16.mxu0 %v3545_v0 }
  0xde   : > { %2071 = vmatmul.mubr.msk.bf16.gmra.mrb[76].mxu0 %vm397_vm0, %v2169_v62 }
  0xdf   : > { %702 = vmatprep.mubr.bf16.mxu0 %v3545_v0 }
  0xe6   : > { %2072 = vmatmul.mubr.msk.bf16.gmra.mrb[80].mxu0 %vm397_vm0, %v2170_v21 }
  0xe7   : > { %712 = vmatprep.mubr.bf16.mxu0 %v3545_v0 }
 0x119   : > { %v504_v30 = vpop.f32.mrb[0].mxu0 }
 0x11a   : > { %v2684_v32 = vpop.f32.mrb[1].mxu0 }
 0x11b   : > { %v508_v33 = vpop.f32.mrb[2].mxu0 }
 0x11c   : > { %v743_v34 = vmax.f32 %v504_v30, %v508_v33  ;;  %v2688_v35 = vpop.f32.mrb[3].mxu0 }
 0x11d   : > { %v752_v36 = vmax.f32 %v2684_v32, %v2688_v35 }
 0x121   : > { %v514_v39 = vpop.f32.mrb[4].mxu0 }
 0x122   : > { %v744_v40 = vmax.f32 %v743_v34, %v514_v39  ;;  %v516_v41 = vpop.f32.mrb[5].mxu0 }
 0x123   : > { %v753_v42 = vmax.f32 %v752_v36, %v516_v41  ;;  %v518_v43 = vpop.f32.mrb[6].mxu0 }
 0x124   : > { %v745_v44 = vmax.f32 %v744_v40, %v518_v43  ;;  %v2702_v45 = vpop.f32.mrb[7].mxu0 }
 0x125   : > { %v754_v46 = vmax.f32 %v753_v42, %v2702_v45 }
 0x126   : > { %v746_v48 = vrot.slane %v745_v44, 4 }
 0x127   : > { %v755_v49 = vrot.slane %v754_v46, 4 }
 0x128   : > { %v747_v50 = vmax.f32 %v745_v44, %v746_v48 }
 0x129   : > { %v756_v51 = vmax.f32 %v754_v46, %v755_v49  ;;  %v2708_v52 = vpop.f32.mrb[8].mxu0 }
 0x12a   : > { %v748_v53 = vrot.slane %v747_v50, 2  ;;  %v2711_v54 = vpop.f32.mrb[9].mxu0 }
 0x12b   : > { %v757_v55 = vrot.slane %v756_v51, 2  ;;  %v2714_v56 = vpop.f32.mrb[10].mxu0 }
 0x12c   : > { %v749_v57 = vmax.f32 %v747_v50, %v748_v53  ;;  %v761_v58 = vmax.f32 %v2708_v52, %v2714_v56  ;;  %v2718_v59 = vpop.f32.mrb[11].mxu0 }
 0x12d   : > { %v758_v60 = vmax.f32 %v756_v51, %v757_v55  ;;  %v770_v61 = vmax.f32 %v2711_v54, %v2718_v59 }
 0x12e   : > { %v750_v63 = vrot.slane %v749_v57, 1 }
 0x12f   : > { %v759_v1 = vrot.slane %v758_v60, 1 }
 0x130   : > { %v751_v2 = vmax.f32 %v749_v57, %v750_v63 }
 0x131   : > { %v760_v3 = vmax.f32 %v758_v60, %v759_v1  ;;  %v2725_v4 = vpop.f32.mrb[12].mxu0 }
 0x132   : > { %v815_v5 = vsub.f32 %v504_v30, %v751_v2  ;;  %v817_v6 = vsub.f32 %v508_v33, %v751_v2  ;;  %v819_v7 = vsub.f32 %v514_v39, %v751_v2  ;;  %v821_v8 = vsub.f32 %v518_v43, %v751_v2  ;;  %v2728_v9 = vpop.f32.mrb[13].mxu0 }
 0x133   : > { %v816_v10 = vsub.f32 %v2684_v32, %v760_v3  ;;  %v818_v11 = vsub.f32 %v2688_v35, %v760_v3  ;;  %v820_v12 = vsub.f32 %v516_v41, %v760_v3  ;;  %v822_v13 = vsub.f32 %v2702_v45, %v760_v3  ;;  %v2734_v14 = vpop.f32.mrb[14].mxu0  ;;  %v2171_v41 = vld [vmem:[%s3540_s1 + $0xa8] sm:$0xff]  }
 0x134   : > { %v847_v15 = vmul.f32 1.442695, %v815_v5  ;;  %v851_v16 = vmul.f32 1.442695, %v817_v6  ;;  %v855_v17 = vmul.f32 1.442695, %v819_v7  ;;  %v762_v18 = vmax.f32 %v761_v58, %v2725_v4  ;;  %2073 = vmatmul.mubr.msk.bf16.gmra.mrb[84].mxu0 %vm397_vm0, %v2171_v41 }
 0x135   : > { %v859_v19 = vmul.f32 1.442695, %v821_v8  ;;  %v771_v20 = vmax.f32 %v770_v61, %v2728_v9  ;;  %v849_v22 = vmul.f32 1.442695, %v816_v10  ;;  %v2742_v24 = vpop.f32.mrb[15].mxu0 }
 0x136   : > { %2176 = vpow2.f32 %v847_v15  ;;  %v763_v23 = vmax.f32 %v762_v18, %v2734_v14  ;;  %v853_v25 = vmul.f32 1.442695, %v818_v11  ;;  %v857_v28 = vmul.f32 1.442695, %v820_v12 }
 0x137   : > { %2178 = vpow2.f32 %v851_v16  ;;  %v772_v26 = vmax.f32 %v771_v20, %v2742_v24  ;;  %v861_v33 = vmul.f32 1.442695, %v822_v13 }
 0x138   : > { %2180 = vpow2.f32 %v855_v17  ;;  %v764_v27 = vrot.slane %v763_v23, 4 }
 0x139   : > { %2182 = vpow2.f32 %v859_v19  ;;  %v773_v29 = vrot.slane %v772_v26, 4  ;;  %v2745_v30 = vpop.f32.mrb[16].mxu0 }
 0x13a   : > { %2184 = vpow2.f32 %v849_v22  ;;  %v765_v31 = vmax.f32 %v763_v23, %v764_v27  ;;  %v2748_v32 = vpop.f32.mrb[17].mxu0 }
 0x13b   : > { %2186 = vpow2.f32 %v853_v25  ;;  %v774_v34 = vmax.f32 %v772_v26, %v773_v29  ;;  %v2751_v35 = vpop.f32.mrb[18].mxu0 }
 0x13c   : > { %v766_v36 = vrot.slane %v765_v31, 2  ;;  %v779_v37 = vmax.f32 %v2745_v30, %v2751_v35  ;;  %v2755_v38 = vpop.f32.mrb[19].mxu0  ;;  %2188 = vpow2.f32 %v857_v28 }
 0x13d   : > { %v775_v39 = vrot.slane %v774_v34, 2  ;;  %v788_v40 = vmax.f32 %v2748_v32, %v2755_v38  ;;  %2190 = vpow2.f32 %v861_v33 }
 0x13e   : > { %v767_v42 = vmax.f32 %v765_v31, %v766_v36 }
 0x13f   : > { %v776_v43 = vmax.f32 %v774_v34, %v775_v39 }
 0x140   : > { %v2762_v44 = vpop.eup %2176  ;;  %v768_v45 = vrot.slane %v767_v42, 1 }
 0x141   : > { %v2764_v46 = vpop.eup %2178  ;;  %v777_v47 = vrot.slane %v776_v43, 1  ;;  %v2766_v48 = vpop.f32.mrb[20].mxu0 }
 0x142   : > { %v2769_v49 = vpop.eup %2180  ;;  %v911_v50 = vadd.f32 %v2764_v46, %v2762_v44  ;;  %v769_v51 = vmax.f32 %v767_v42, %v768_v45  ;;  %v780_v53 = vmax.f32 %v779_v37, %v2766_v48  ;;  %v2774_v55 = vpop.f32.mrb[21].mxu0 }
 0x143   : > { %v2776_v57 = vpop.eup %2182  ;;  %v778_v58 = vmax.f32 %v776_v43, %v777_v47  ;;  %v789_v60 = vmax.f32 %v788_v40, %v2774_v55  ;;  %v2779_v61 = vpop.f32.mrb[22].mxu0 }
 0x144   : > { %v2781_v62 = vpop.eup %2184  ;;  %v912_v63 = vadd.f32 %v2769_v49, %v911_v50  ;;  %v823_v1 = vsub.f32 %v2708_v52, %v769_v51  ;;  %v825_v2 = vsub.f32 %v2714_v56, %v769_v51  ;;  %v827_v3 = vsub.f32 %v2725_v4, %v769_v51  ;;  %v2787_v5 = vpop.f32.mrb[23].mxu0 }
 0x145   : > { %v2789_v6 = vpop.eup %2186  ;;  %v829_v7 = vsub.f32 %v2734_v14, %v769_v51  ;;  %v824_v8 = vsub.f32 %v2711_v54, %v778_v58  ;;  %v826_v10 = vsub.f32 %v2718_v59, %v778_v58  ;;  %v828_v11 = vsub.f32 %v2728_v9, %v778_v58 }
 0x146   : > { %v913_v12 = vadd.f32 %v2776_v57, %v912_v63  ;;  %v920_v52 = vadd.f32 %v2789_v6, %v2781_v62  ;;  %v863_v56 = vmul.f32 1.442695, %v823_v1  ;;  %v867_v13 = vmul.f32 1.442695, %v825_v2  ;;  %v2798_v4 = vpop.eup %2188 }
 0x147   : > { %v871_v15 = vmul.f32 1.442695, %v827_v3  ;;  %v875_v16 = vmul.f32 1.442695, %v829_v7  ;;  %v830_v17 = vsub.f32 %v2742_v24, %v778_v58  ;;  %v865_v59 = vmul.f32 1.442695, %v824_v8  ;;  %v2802_v18 = vpop.eup %2190 }
 0x148   : > { %v914_v14 = vrot.slane %v913_v12, 4  ;;  %v921_v54 = vadd.f32 %v2798_v4, %v920_v52  ;;  %2192 = vpow2.f32 %v863_v56  ;;  %v869_v9 = vmul.f32 1.442695, %v826_v10 }
 0x149   : > { %2194 = vpow2.f32 %v867_v13  ;;  %v781_v19 = vmax.f32 %v780_v53, %v2779_v61  ;;  %v2805_v20 = vpop.f32.mrb[24].mxu0  ;;  %v790_v23 = vmax.f32 %v789_v60, %v2787_v5  ;;  %v873_v25 = vmul.f32 1.442695, %v828_v11 }
 0x14a   : > { %v915_v21 = vadd.f32 %v914_v14, %v913_v12  ;;  %v922_v22 = vadd.f32 %v2802_v18, %v921_v54  ;;  %2196 = vpow2.f32 %v871_v15  ;;  %v2809_v24 = vpop.f32.mrb[25].mxu0  ;;  %v877_v26 = vmul.f32 1.442695, %v830_v17 }
 0x14b   : > { %2198 = vpow2.f32 %v875_v16  ;;  %v782_v27 = vrot.slane %v781_v19, 4  ;;  %v2811_v28 = vpop.f32.mrb[26].mxu0  ;;  %v791_v33 = vrot.slane %v790_v23, 4 }
 0x14c   : > { %v916_v29 = vrot.slane %v915_v21, 2  ;;  %v923_v31 = vrot.slane %v922_v22, 4  ;;  %2200 = vpow2.f32 %v865_v59  ;;  %v2813_v34 = vpop.f32.mrb[27].mxu0  ;;  %v797_v37 = vmax.f32 %v2805_v20, %v2811_v28 }
 0x14d   : > { %2202 = vpow2.f32 %v869_v9  ;;  %v783_v36 = vmax.f32 %v781_v19, %v782_v27  ;;  %v806_v39 = vmax.f32 %v2809_v24, %v2813_v34  ;;  %v792_v42 = vmax.f32 %v790_v23, %v791_v33 }
 0x14e   : > { %v917_v40 = vadd.f32 %v916_v29, %v915_v21  ;;  %v924_v41 = vadd.f32 %v923_v31, %v922_v22  ;;  %2204 = vpow2.f32 %v873_v25 }
 0x14f   : > { %v784_v43 = vrot.slane %v783_v36, 2  ;;  %v793_v50 = vrot.slane %v792_v42, 2  ;;  %2206 = vpow2.f32 %v877_v26 }
 0x150   : > { %v918_v45 = vrot.slane %v917_v40, 1  ;;  %v925_v47 = vrot.slane %v924_v41, 2 }
 0x151   : > { %v785_v51 = vmax.f32 %v783_v36, %v784_v43  ;;  %v2819_v53 = vpop.f32.mrb[28].mxu0  ;;  %v794_v1 = vmax.f32 %v792_v42, %v793_v50 }
 0x152   : > { %v2821_v58 = vpop.eup %2192  ;;  %v919_v60 = vadd.f32 %v918_v45, %v917_v40  ;;  %v926_v63 = vadd.f32 %v925_v47, %v924_v41  ;;  %v798_v2 = vmax.f32 %v797_v37, %v2819_v53  ;;  %v2824_v3 = vpop.f32.mrb[29].mxu0 }
 0x153   : > { %v2826_v7 = vpop.eup %2194  ;;  %v786_v8 = vrot.slane %v785_v51, 1  ;;  %v807_v10 = vmax.f32 %v806_v39, %v2824_v3  ;;  %v2829_v11 = vpop.f32.mrb[30].mxu0  ;;  %v795_v13 = vrot.slane %v794_v1, 1 }
 0x154   : > { %v2831_v12 = vpop.eup %2196  ;;  %2208 = vrcp.f32 %v919_v60  ;;  %v927_v52 = vrot.slane %v926_v63, 1  ;;  %v929_v56 = vadd.f32 %v2826_v7, %v2821_v58  ;;  %v2835_v15 = vpop.f32.mrb[31].mxu0  ;;  %v799_v14 = vmax.f32 %v798_v2, %v2829_v11 }
 0x155   : > { %v2837_v16 = vpop.eup %2198  ;;  %v787_v17 = vmax.f32 %v785_v51, %v786_v8  ;;  %v808_v54 = vmax.f32 %v807_v10, %v2835_v15  ;;  %v796_v21 = vmax.f32 %v794_v1, %v795_v13 }
 0x156   : > { %v2841_v59 = vpop.eup %2200  ;;  %v928_v9 = vadd.f32 %v927_v52, %v926_v63  ;;  %v930_v19 = vadd.f32 %v2831_v12, %v929_v56  ;;  %v800_v1 = vrot.slane %v799_v14, 4 }
 0x157   : > { %v2844_v22 = vpop.eup %2202  ;;  %v831_v23 = vsub.f32 %v2745_v30, %v787_v17  ;;  %v833_v25 = vsub.f32 %v2751_v35, %v787_v17  ;;  %v835_v26 = vsub.f32 %v2766_v48, %v787_v17  ;;  %v837_v27 = vsub.f32 %v2779_v61, %v787_v17 }
 0x158   : > { %2210 = vrcp.f32 %v928_v9  ;;  %v931_v29 = vadd.f32 %v2837_v16, %v930_v19  ;;  %v938_v31 = vadd.f32 %v2844_v22, %v2841_v59  ;;  %v832_v33 = vsub.f32 %v2748_v32, %v796_v21  ;;  %v2854_v36 = vpop.eup %2204 }
 0x159   : > { %v879_v37 = vmul.f32 1.442695, %v831_v23  ;;  %v883_v39 = vmul.f32 1.442695, %v833_v25  ;;  %v887_v40 = vmul.f32 1.442695, %v835_v26  ;;  %v834_v30 = vsub.f32 %v2755_v38, %v796_v21  ;;  %v2861_v43 = vpop.eup %2206 }
 0x15a   : > { %v932_v35 = vrot.slane %v931_v29, 4  ;;  %v939_v48 = vadd.f32 %v2854_v36, %v938_v31  ;;  %v891_v41 = vmul.f32 1.442695, %v837_v27  ;;  %v836_v61 = vsub.f32 %v2774_v55, %v796_v21  ;;  %v2859_v42 = vpop.f32.mrb[32].mxu0 }
 0x15b   : > { %2212 = vpow2.f32 %v879_v37  ;;  %v838_v32 = vsub.f32 %v2787_v5, %v796_v21  ;;  %v881_v45 = vmul.f32 1.442695, %v832_v33  ;;  %v885_v47 = vmul.f32 1.442695, %v834_v30  ;;  %v2864_v50 = vpop.f32.mrb[33].mxu0 }
 0x15c   : > { %v933_v51 = vadd.f32 %v932_v35, %v931_v29  ;;  %v940_v38 = vadd.f32 %v2861_v43, %v939_v48  ;;  %2214 = vpow2.f32 %v883_v39  ;;  %v889_v60 = vmul.f32 1.442695, %v836_v61  ;;  %v2867_v63 = vpop.f32.mrb[34].mxu0 }
 0x15d   : > { %2216 = vpow2.f32 %v887_v40  ;;  %v893_v55 = vmul.f32 1.442695, %v838_v32  ;;  %v809_v2 = vrot.slane %v808_v54, 4  ;;  %v2869_v8 = vpop.f32.mrb[35].mxu0  ;;  %v1023_v56 = vmax.f32 %v2859_v42, %v2864_v50 }
 0x15e   : > { %v2209_v10 = vpop.eup %2208  ;;  %v934_v52 = vrot.slane %v933_v51, 2  ;;  %v941_v5 = vrot.slane %v940_v38, 4  ;;  %2218 = vpow2.f32 %v891_v41  ;;  %v801_v13 = vmax.f32 %v799_v14, %v800_v1 }
 0x15f   : > { %2220 = vpow2.f32 %v881_v45  ;;  %v810_v17 = vmax.f32 %v808_v54, %v809_v2  ;;  %v1026_v9 = vmax.f32 %v2867_v63, %v2869_v8  ;;  %1024 = vmax.xlane.f32.xlu0 %v1023_v56  ;;  %v2876_v23 = vmul.f32 %v2209_v10, %v2762_v44 }
 0x160   : > { %v935_v19 = vadd.f32 %v934_v52, %v933_v51  ;;  %v942_v21 = vadd.f32 %v941_v5, %v940_v38  ;;  %2222 = vpow2.f32 %v885_v47  ;;  %v802_v25 = vrot.slane %v801_v13, 2 }
 0x161   : > { %3588 = vst [vmem:[#allocation8_spill] sm:$0xff] %v2876_v23  ;;  %2224 = vpow2.f32 %v889_v60  ;;  %v811_v26 = vrot.slane %v810_v17, 2  ;;  %v2878_v27 = vpop.f32.mrb[36].mxu0  ;;  %v2881_v29 = vmul.f32 %v2209_v10, %v2764_v46  ;;  %v2886_v37 = vmul.f32 %v2209_v10, %v2769_v49 }
 0x162   : > { %v2211_v14 = vpop.eup %2210  ;;  %v936_v54 = vrot.slane %v935_v19, 1  ;;  %v943_v31 = vrot.slane %v942_v21, 2  ;;  %2226 = vpow2.f32 %v893_v55  ;;  %v2883_v33 = vpop.f32.mrb[37].mxu0  ;;  %v803_v39 = vmax.f32 %v801_v13, %v802_v25 }
 0x163   : > { %3589 = vst [vmem:[#allocation9_spill] sm:$0xff] %v2881_v29  ;;  %3590 = vst [vmem:[#allocation10_spill] sm:$0xff] %v2886_v37  ;;  %v812_v44 = vmax.f32 %v810_v17, %v811_v26  ;;  %v2888_v40 = vpop.f32.mrb[38].mxu0  ;;  %v1029_v30 = vmax.f32 %v2878_v27, %v2883_v33  ;;  %v2893_v35 = vmul.f32 %v2211_v14, %v2781_v62  ;;  %1027 = vmax.xlane.f32.xlu0 %v1026_v9 }
 0x164   : > { %v937_v46 = vadd.f32 %v936_v54, %v935_v19  ;;  %v944_v48 = vadd.f32 %v943_v31, %v942_v21  ;;  %v2895_v41 = vpop.f32.mrb[39].mxu0  ;;  %v2898_v61 = vmul.f32 %v2211_v14, %v2789_v6  ;;  %v804_v45 = vrot.slane %v803_v39, 1 }
 0x165   : > { %3591 = vst [vmem:[#allocation11_spill] sm:$0xff] %v2893_v35  ;;  %v2902_v32 = vpop.eup %2212  ;;  %v813_v47 = vrot.slane %v812_v44, 1  ;;  %1030 = vmax.xlane.f32.xlu1 %v1029_v30  ;;  %v1032_v62 = vmax.f32 %v2888_v40, %v2895_v41  ;;  %v2907_v51 = vmul.f32 %v2211_v14, %v2798_v4  ;;  %v2914_v55 = vmul.f32 %v2211_v14, %v2802_v18 }
 0x166   : > { %v2909_v38 = vpop.eup %2214  ;;  %2228 = vrcp.f32 %v937_v46  ;;  %v945_v60 = vrot.slane %v944_v48, 1  ;;  %v805_v52 = vmax.f32 %v803_v39, %v804_v45  ;;  %v2921_v4 = vmul.f32 %v2209_v10, %v2776_v57 }
 0x167   : > { %3592 = vst [vmem:[#allocation12_spill] sm:$0xff] %v2907_v51  ;;  %3593 = vst [vmem:[#allocation13_spill] sm:$0xff] %v2914_v55  ;;  %v2916_v1 = vpop.eup %2216  ;;  %v947_v2 = vadd.f32 %v2909_v38, %v2902_v32  ;;  %v814_v5 = vmax.f32 %v812_v44, %v813_v47 }
 0x168   : > { %3594 = vst [vmem:[#allocation14_spill] sm:$0xff] %v2921_v4  ;;  %v2923_v56 = vpop.eup %2218  ;;  %v946_v13 = vadd.f32 %v945_v60, %v944_v48  ;;  %v839_v19 = vsub.f32 %v2805_v20, %v805_v52  ;;  %v841_v21 = vsub.f32 %v2811_v28, %v805_v52  ;;  %v843_v25 = vsub.f32 %v2819_v53, %v805_v52 }
 0x169   : > { %v2927_v9 = vpop.eup %2220  ;;  %v948_v18 = vadd.f32 %v2916_v1, %v947_v2  ;;  %1033 = vmax.xlane.f32.xlu1 %v1032_v62  ;;  %v2933_v26 = vpop.f32.mrb[40].mxu0  ;;  %v845_v10 = vsub.f32 %v2829_v11, %v805_v52  ;;  %v840_v14 = vsub.f32 %v2809_v24, %v814_v5  ;;  %v842_v54 = vsub.f32 %v2813_v34, %v814_v5 }
 0x16a   : > { %v2935_v57 = vpop.eup %2222  ;;  %2230 = vrcp.f32 %v946_v13  ;;  %v2940_v31 = vpop.f32.mrb[41].mxu0  ;;  %v895_v53 = vmul.f32 1.442695, %v839_v19  ;;  %v899_v44 = vmul.f32 1.442695, %v841_v21  ;;  %v844_v24 = vsub.f32 %v2824_v3, %v814_v5 }
 0x16b   : > { %v2942_v39 = vpop.eup %2224  ;;  %v949_v20 = vadd.f32 %v2923_v56, %v948_v18  ;;  %v956_v28 = vadd.f32 %v2935_v57, %v2927_v9  ;;  %v2947_v30 = vpop.f32.mrb[42].mxu0  ;;  %v903_v11 = vmul.f32 1.442695, %v843_v25  ;;  %v907_v48 = vmul.f32 1.442695, %v845_v10 }
 0x16c   : > { %v2949_v46 = vpop.eup %2226  ;;  %v846_v34 = vsub.f32 %v2835_v15, %v814_v5  ;;  %v2953_v45 = vpop.f32.mrb[43].mxu0  ;;  %2232 = vpow2.f32 %v895_v53  ;;  %v897_v60 = vmul.f32 1.442695, %v840_v14  ;;  %v901_v2 = vmul.f32 1.442695, %v842_v54 }
 0x16d   : > { %v950_v47 = vrot.slane %v949_v20, 4  ;;  %v957_v62 = vadd.f32 %v2942_v39, %v956_v28  ;;  %2234 = vpow2.f32 %v899_v44  ;;  %v905_v52 = vmul.f32 1.442695, %v844_v24 }
 0x16e   : > { %2236 = vpow2.f32 %v903_v11  ;;  %v1035_v19 = vmax.f32 %v2933_v26, %v2940_v31  ;;  %v909_v15 = vmul.f32 1.442695, %v846_v34  ;;  %v1038_v5 = vmax.f32 %v2947_v30, %v2953_v45 }
 0x16f   : > { %v951_v13 = vadd.f32 %v950_v47, %v949_v20  ;;  %v958_v18 = vadd.f32 %v2949_v46, %v957_v62  ;;  %2238 = vpow2.f32 %v907_v48 }
 0x170   : > { %v2229_v3 = vpop.eup %2228  ;;  %2240 = vpow2.f32 %v897_v60  ;;  %1036 = vmax.xlane.f32.xlu0 %v1035_v19  ;;  %1039 = vmax.xlane.f32.xlu1 %v1038_v5 }
 0x171   : > { %v952_v25 = vrot.slane %v951_v13, 2  ;;  %v959_v10 = vrot.slane %v958_v18, 4  ;;  %v2963_v14 = vpop.f32.mrb[44].mxu0  ;;  %v2966_v54 = vmul.f32 %v2229_v3, %v2821_v58  ;;  %2242 = vpow2.f32 %v901_v2 }
 0x172   : > { %v2968_v20 = vpop.f32.mrb[45].mxu0  ;;  %v2971_v28 = vmul.f32 %v2229_v3, %v2826_v7  ;;  %v2974_v53 = vmul.f32 %v2229_v3, %v2831_v12  ;;  %v2977_v44 = vmul.f32 %v2229_v3, %v2837_v16  ;;  %2244 = vpow2.f32 %v905_v52 }
 0x173   : > { %3595 = vst [vmem:[#allocation15_spill] sm:$0xff] %v2966_v54  ;;  %v953_v11 = vadd.f32 %v952_v25, %v951_v13  ;;  %v960_v48 = vadd.f32 %v959_v10, %v958_v18  ;;  %v2979_v24 = vpop.f32.mrb[46].mxu0  ;;  %v1041_v58 = vmax.f32 %v2963_v14, %v2968_v20  ;;  %2246 = vpow2.f32 %v909_v15 }
 0x174   : > { %3596 = vst [vmem:[#allocation16_spill] sm:$0xff] %v2971_v28  ;;  %3597 = vst [vmem:[#allocation17_spill] sm:$0xff] %v2974_v53  ;;  %v2231_v34 = vpop.eup %2230  ;;  %v2983_v47 = vpop.f32.mrb[47].mxu0 }
 0x175   : > { %3598 = vst [vmem:[#allocation18_spill] sm:$0xff] %v2977_v44  ;;  %v954_v62 = vrot.slane %v953_v11, 1  ;;  %v961_v16 = vrot.slane %v960_v48, 2  ;;  %1042 = vmax.xlane.f32.xlu0 %v1041_v58  ;;  %v1044_v60 = vmax.f32 %v2979_v24, %v2983_v47  ;;  %v2992_v2 = vmul.f32 %v2231_v34, %v2841_v59 }
 0x176   : > { %v2995_v52 = vmul.f32 %v2231_v34, %v2844_v22  ;;  %v2998_v13 = vmul.f32 %v2231_v34, %v2854_v36  ;;  %v3001_v18 = vmul.f32 %v2231_v34, %v2861_v43  ;;  %v3003_v19 = vpop.eup %2232 }
 0x177   : > { %3599 = vst [vmem:[#allocation19_spill] sm:$0xff] %v2992_v2  ;;  %v955_v3 = vadd.f32 %v954_v62, %v953_v11  ;;  %v962_v5 = vadd.f32 %v961_v16, %v960_v48  ;;  %1045 = vmax.xlane.f32.xlu1 %v1044_v60  ;;  %v3005_v25 = vpop.eup %2234 }
 0x178   : > { %3600 = vst [vmem:[#allocation20_spill] sm:$0xff] %v2995_v52  ;;  %3601 = vst [vmem:[#allocation21_spill] sm:$0xff] %v2998_v13  ;;  %v3011_v15 = vpop.eup %2236  ;;  %v965_v43 = vadd.f32 %v3005_v25, %v3003_v19 }
 0x179   : > { %3602 = vst [vmem:[#allocation22_spill] sm:$0xff] %v3001_v18  ;;  %2248 = vrcp.f32 %v955_v3  ;;  %v963_v36 = vrot.slane %v962_v5, 1  ;;  %v3015_v10 = vpop.f32.mrb[48].mxu0  ;;  %v3017_v11 = vpop.eup %2238 }
 0x17a   : > { %v3019_v48 = vpop.f32.mrb[49].mxu0  ;;  %v3021_v58 = vpop.eup %2240  ;;  %v966_v62 = vadd.f32 %v3011_v15, %v965_v43 }
 0x17b   : > { %v964_v34 = vadd.f32 %v963_v36, %v962_v5  ;;  %v3024_v16 = vpop.f32.mrb[50].mxu0  ;;  %v1047_v60 = vmax.f32 %v3015_v10, %v3019_v48  ;;  %v3028_v3 = vpop.eup %2242 }
 0x17c   : > { %v3030_v12 = vpop.f32.mrb[51].mxu0  ;;  %v967_v22 = vadd.f32 %v3017_v11, %v966_v62  ;;  %v974_v7 = vadd.f32 %v3028_v3, %v3021_v58  ;;  %v3037_v36 = vpop.eup %2244 }
 0x17d   : > { %2250 = vrcp.f32 %v964_v34  ;;  %1048 = vmax.xlane.f32.xlu0 %v1047_v60  ;;  %v1050_v5 = vmax.f32 %v3024_v16, %v3030_v12  ;;  %v3040_v59 = vpop.eup %2246 }
 0x17e   : > { %v968_v43 = vrot.slane %v967_v22, 4  ;;  %v975_v0 = vadd.f32 %v3037_v36, %v974_v7 }
 0x17f   : > { %1051 = vmax.xlane.f32.xlu1 %v1050_v5 }
 0x180   : > { %v969_v21 = vadd.f32 %v968_v43, %v967_v22  ;;  %v976_v34 = vadd.f32 %v3040_v59, %v975_v0 }
 0x181   : > { %v3043_v17 = vpop.f32.mrb[52].mxu0 }
 0x182   : > { %v3045_v62 = vpop.f32.mrb[53].mxu0  ;;  %v970_v60 = vrot.slane %v969_v21, 2  ;;  %v977_v6 = vrot.slane %v976_v34, 4 }
 0x183   : > { %v2249_v49 = vpop.eup %2248  ;;  %v3047_v53 = vpop.f32.mrb[54].mxu0  ;;  %v1053_v44 = vmax.f32 %v3043_v17, %v3045_v62 }
 0x184   : > { %v3051_v13 = vpop.f32.mrb[55].mxu0  ;;  %v3054_v7 = vmul.f32 %v2249_v49, %v2902_v32  ;;  %v3057_v22 = vmul.f32 %v2249_v49, %v2909_v38  ;;  %v3060_v0 = vmul.f32 %v2249_v49, %v2916_v1  ;;  %v3063_v5 = vmul.f32 %v2249_v49, %v2923_v56 }
 0x185   : > { %v971_v43 = vadd.f32 %v970_v60, %v969_v21  ;;  %v978_v18 = vadd.f32 %v977_v6, %v976_v34  ;;  %1054 = vmax.xlane.f32.xlu0 %v1053_v44  ;;  %v1056_v54 = vmax.f32 %v3047_v53, %v3051_v13 }
 0x186   : > { %3603 = vst [vmem:[#allocation23_spill] sm:$0xff] %v3054_v7  ;;  %3604 = vst [vmem:[#allocation24_spill] sm:$0xff] %v3057_v22 }
 0x187   : > { %3605 = vst [vmem:[#allocation25_spill] sm:$0xff] %v3060_v0  ;;  %3606 = vst [vmem:[#allocation26_spill] sm:$0xff] %v3063_v5  ;;  %v2251_v38 = vpop.eup %2250  ;;  %v972_v2 = vrot.slane %v971_v43, 1  ;;  %v979_v52 = vrot.slane %v978_v18, 2  ;;  %1057 = vmax.xlane.f32.xlu1 %v1056_v54 }
 0x188   : > { %v3072_v1 = vmul.f32 %v2251_v38, %v2927_v9  ;;  %v3075_v49 = vmul.f32 %v2251_v38, %v2935_v57  ;;  %v3078_v6 = vmul.f32 %v2251_v38, %v2942_v39  ;;  %v3081_v56 = vmul.f32 %v2251_v38, %v2949_v46 }
 0x189   : > { %v973_v21 = vadd.f32 %v972_v2, %v971_v43  ;;  %v980_v44 = vadd.f32 %v979_v52, %v978_v18  ;;  %v3083_v34 = vpop.f32.mrb[56].mxu0 }
 0x18a   : > { %3607 = vst [vmem:[#allocation27_spill] sm:$0xff] %v3072_v1  ;;  %3608 = vst [vmem:[#allocation28_spill] sm:$0xff] %v3075_v49  ;;  %v3085_v60 = vpop.f32.mrb[57].mxu0 }
 0x18b   : > { %3609 = vst [vmem:[#allocation29_spill] sm:$0xff] %v3078_v6  ;;  %3610 = vst [vmem:[#allocation30_spill] sm:$0xff] %v3081_v56  ;;  %2252 = vrcp.f32 %v973_v21  ;;  %v981_v57 = vrot.slane %v980_v44, 1  ;;  %v3091_v32 = vpop.f32.mrb[58].mxu0  ;;  %v1059_v39 = vmax.f32 %v3083_v34, %v3085_v60 }
 0x18c   : > { %v3095_v46 = vpop.f32.mrb[59].mxu0 }
 0x18d   : > { %v982_v2 = vadd.f32 %v981_v57, %v980_v44  ;;  %1060 = vmax.xlane.f32.xlu0 %v1059_v39  ;;  %v1062_v52 = vmax.f32 %v3091_v32, %v3095_v46 }
 0x18f   : > { %2254 = vrcp.f32 %v982_v2  ;;  %1063 = vmax.xlane.f32.xlu1 %v1062_v52 }
 0x191   : > { %v3099_v18 = vpop.f32.mrb[60].mxu0 }
 0x192   : > { %v3101_v43 = vpop.f32.mrb[61].mxu0 }
 0x193   : > { %v3103_v38 = vpop.f32.mrb[62].mxu0  ;;  %v1065_v21 = vmax.f32 %v3099_v18, %v3101_v43 }
 0x194   : > { %v3107_v9 = vpop.f32.mrb[63].mxu0 }
 0x195   : > { %v2253_v28 = vpop.eup %2252  ;;  %1066 = vmax.xlane.f32.xlu0 %v1065_v21  ;;  %v1068_v44 = vmax.f32 %v3103_v38, %v3107_v9 }
 0x196   : > { %v3112_v57 = vmul.f32 %v2253_v28, %v3003_v19  ;;  %v3115_v39 = vmul.f32 %v2253_v28, %v3005_v25  ;;  %v3118_v2 = vmul.f32 %v2253_v28, %v3011_v15  ;;  %v3121_v52 = vmul.f32 %v2253_v28, %v3017_v11 }
 0x197   : > { %1069 = vmax.xlane.f32.xlu1 %v1068_v44 }
 0x198   : > { %3611 = vst [vmem:[#allocation31_spill] sm:$0xff] %v3112_v57  ;;  %3612 = vst [vmem:[#allocation32_spill] sm:$0xff] %v3115_v39 }
 0x199   : > { %3613 = vst [vmem:[#allocation33_spill] sm:$0xff] %v3118_v2  ;;  %3614 = vst [vmem:[#allocation34_spill] sm:$0xff] %v3121_v52  ;;  %v2255_v0 = vpop.eup %2254  ;;  %v664_v21 = vpop.f32.mrb[64].mxu0 }
 0x19a   : > { %v3128_v19 = vmul.f32 %v2255_v0, %v3021_v58  ;;  %v3131_v25 = vmul.f32 %v2255_v0, %v3028_v3  ;;  %v3134_v15 = vmul.f32 %v2255_v0, %v3037_v36  ;;  %v3137_v28 = vmul.f32 %v2255_v0, %v3040_v59  ;;  %v666_v2 = vpop.f32.mrb[65].mxu0 }
 0x19b   : > { %v668_v52 = vpop.f32.mrb[66].mxu0 }
 0x19c   : > { %3615 = vst [vmem:[#allocation35_spill] sm:$0xff] %v3128_v19  ;;  %3616 = vst [vmem:[#allocation36_spill] sm:$0xff] %v3131_v25  ;;  %v1279_v57 = vpack.c.bf16 %v668_v52, %v664_v21  ;;  %v670_v36 = vpop.f32.mrb[67].mxu0 }
 0x19d   : > { %3617 = vst [vmem:[#allocation37_spill] sm:$0xff] %v3134_v15  ;;  %3618 = vst [vmem:[#allocation38_spill] sm:$0xff] %v3137_v28  ;;  %v1280_v59 = vpack.c.bf16 %v670_v36, %v666_v2 }
 0x19f   : > { %1295 = vmatprep.subr.bf16.mxu1 %v1280_v59 }
 0x1a0   : > { %1296 = vmatpush1.bf16.xpose.msra.mxu1 %v1279_v57 }
 0x1ec   : > { %v1025_v54 = vpop.xlane.xlu0 %1024 }
 0x1ed   : > { %v1071_v58 = vsub.f32 %v2859_v42, %v1025_v54  ;;  %v1072_v3 = vsub.f32 %v2864_v50, %v1025_v54 }
 0x1ef   : > { %v1103_v39 = vmul.f32 1.442695, %v1071_v58  ;;  %v1105_v5 = vmul.f32 1.442695, %v1072_v3 }
 0x1f0   : > { %v1028_v0 = vpop.xlane.xlu0 %1027 }
 0x1f1   : > { %2256 = vpow2.f32 %v1103_v39  ;;  %v1073_v11 = vsub.f32 %v2867_v63, %v1028_v0  ;;  %v1074_v19 = vsub.f32 %v2869_v8, %v1028_v0 }
 0x1f2   : > { %v1031_v44 = vpop.xlane.xlu1 %1030  ;;  %2258 = vpow2.f32 %v1105_v5 }
 0x1f3   : > { %v1075_v15 = vsub.f32 %v2878_v27, %v1031_v44  ;;  %v1076_v42 = vsub.f32 %v2883_v33, %v1031_v44  ;;  %v1107_v50 = vmul.f32 1.442695, %v1073_v11  ;;  %v1109_v54 = vmul.f32 1.442695, %v1074_v19 }
 0x1f5   : > { %v1111_v52 = vmul.f32 1.442695, %v1075_v15  ;;  %v1113_v21 = vmul.f32 1.442695, %v1076_v42  ;;  %2260 = vpow2.f32 %v1107_v50 }
 0x1f6   : > { %v1034_v2 = vpop.xlane.xlu1 %1033  ;;  %2262 = vpow2.f32 %v1109_v54 }
 0x1f7   : > { %v1077_v39 = vsub.f32 %v2888_v40, %v1034_v2  ;;  %v1078_v63 = vsub.f32 %v2895_v41, %v1034_v2  ;;  %2264 = vpow2.f32 %v1111_v52 }
 0x1f8   : > { %2266 = vpow2.f32 %v1113_v21 }
 0x1f9   : > { %v1115_v8 = vmul.f32 1.442695, %v1077_v39  ;;  %v1117_v5 = vmul.f32 1.442695, %v1078_v63 }
 0x1fb   : > { %2268 = vpow2.f32 %v1115_v8  ;;  %v3151_v27 = vpop.eup %2256 }
 0x1fc   : > { %2270 = vpow2.f32 %v1117_v5  ;;  %v3153_v33 = vpop.eup %2258 }
 0x1fd   : > { %v1037_v57 = vpop.xlane.xlu0 %1036  ;;  %v1167_v19 = vadd.f32 %v3153_v33, %v3151_v27  ;;  %v1040_v11 = vpop.xlane.xlu1 %1039 }
 0x1fe   : > { %v1079_v15 = vsub.f32 %v2933_v26, %v1037_v57  ;;  %v1080_v40 = vsub.f32 %v2940_v31, %v1037_v57  ;;  %v1081_v44 = vsub.f32 %v2947_v30, %v1040_v11  ;;  %v1082_v58 = vsub.f32 %v2953_v45, %v1040_v11 }
 0x1ff   : > { %v3159_v41 = vpop.eup %2260  ;;  %1168 = vadd.xlane.f32.xlu0 %v1167_v19 }
 0x200   : > { %v3163_v3 = vpop.eup %2262  ;;  %v1119_v36 = vmul.f32 1.442695, %v1079_v15  ;;  %v1121_v59 = vmul.f32 1.442695, %v1080_v40  ;;  %v1123_v42 = vmul.f32 1.442695, %v1081_v44 }
 0x201   : > { %v3165_v0 = vpop.eup %2264  ;;  %v1125_v50 = vmul.f32 1.442695, %v1082_v58  ;;  %v1170_v26 = vadd.f32 %v3163_v3, %v3159_v41 }
 0x202   : > { %v1043_v31 = vpop.xlane.xlu0 %1042  ;;  %v3169_v54 = vpop.eup %2266  ;;  %2272 = vpow2.f32 %v1119_v36 }
 0x203   : > { %v1083_v30 = vsub.f32 %v2963_v14, %v1043_v31  ;;  %v1084_v45 = vsub.f32 %v2968_v20, %v1043_v31  ;;  %2274 = vpow2.f32 %v1121_v59  ;;  %1171 = vadd.xlane.f32.xlu1 %v1170_v26  ;;  %v1173_v21 = vadd.f32 %v3169_v54, %v3165_v0 }
 0x204   : > { %v1046_v52 = vpop.xlane.xlu1 %1045  ;;  %2276 = vpow2.f32 %v1123_v42 }
 0x205   : > { %v3175_v2 = vpop.eup %2268  ;;  %v1127_v39 = vmul.f32 1.442695, %v1083_v30  ;;  %v1129_v63 = vmul.f32 1.442695, %v1084_v45  ;;  %v1085_v8 = vsub.f32 %v2979_v24, %v1046_v52  ;;  %2278 = vpow2.f32 %v1125_v50  ;;  %1174 = vadd.xlane.f32.xlu0 %v1173_v21 }
 0x206   : > { %v3178_v5 = vpop.eup %2270  ;;  %v1086_v14 = vsub.f32 %v2983_v47, %v1046_v52 }
 0x207   : > { %2280 = vpow2.f32 %v1127_v39  ;;  %v1131_v20 = vmul.f32 1.442695, %v1085_v8  ;;  %v1176_v57 = vadd.f32 %v3178_v5, %v3175_v2 }
 0x208   : > { %2282 = vpow2.f32 %v1129_v63  ;;  %v1133_v19 = vmul.f32 1.442695, %v1086_v14 }
 0x209   : > { %2284 = vpow2.f32 %v1131_v20  ;;  %1177 = vadd.xlane.f32.xlu1 %v1176_v57 }
 0x20a   : > { %2286 = vpow2.f32 %v1133_v19  ;;  %v1049_v15 = vpop.xlane.xlu0 %1048 }
 0x20b   : > { %v1087_v40 = vsub.f32 %v3015_v10, %v1049_v15  ;;  %v1088_v24 = vsub.f32 %v3019_v48, %v1049_v15 }
 0x20c   : > { %v1052_v11 = vpop.xlane.xlu1 %1051  ;;  %v3185_v44 = vpop.eup %2272 }
 0x20d   : > { %v1135_v47 = vmul.f32 1.442695, %v1087_v40  ;;  %v1137_v58 = vmul.f32 1.442695, %v1088_v24  ;;  %v1089_v36 = vsub.f32 %v3024_v16, %v1052_v11  ;;  %v1090_v59 = vsub.f32 %v3030_v12, %v1052_v11  ;;  %v3189_v42 = vpop.eup %2274  ;;  %v674_v11 = vpop.f32.mrb[68].mxu0 }
 0x20e   : > { %v3191_v50 = vpop.eup %2276  ;;  %v1179_v10 = vadd.f32 %v3189_v42, %v3185_v44 }
 0x20f   : > { %2288 = vpow2.f32 %v1135_v47  ;;  %v1139_v26 = vmul.f32 1.442695, %v1089_v36  ;;  %v1141_v31 = vmul.f32 1.442695, %v1090_v59  ;;  %v3195_v48 = vpop.eup %2278 }
 0x210   : > { %2290 = vpow2.f32 %v1137_v58  ;;  %1180 = vadd.xlane.f32.xlu0 %v1179_v10  ;;  %v1182_v12 = vadd.f32 %v3195_v48, %v3191_v50 }
 0x211   : > { %v3197_v30 = vpop.eup %2280  ;;  %2292 = vpow2.f32 %v1139_v26 }
 0x212   : > { %v3201_v16 = vpop.eup %2282  ;;  %2294 = vpow2.f32 %v1141_v31  ;;  %v1055_v45 = vpop.xlane.xlu0 %1054  ;;  %1183 = vadd.xlane.f32.xlu1 %v1182_v12 }
 0x213   : > { %v3203_v52 = vpop.eup %2284  ;;  %v1091_v21 = vsub.f32 %v3043_v17, %v1055_v45  ;;  %v1092_v39 = vsub.f32 %v3045_v62, %v1055_v45  ;;  %v1185_v63 = vadd.f32 %v3201_v16, %v3197_v30 }
 0x214   : > { %v3209_v8 = vpop.eup %2286  ;;  %v1058_v14 = vpop.xlane.xlu1 %1057 }
 0x215   : > { %v1143_v20 = vmul.f32 1.442695, %v1091_v21  ;;  %v1145_v57 = vmul.f32 1.442695, %v1092_v39  ;;  %v1093_v19 = vsub.f32 %v3047_v53, %v1058_v14  ;;  %v1094_v15 = vsub.f32 %v3051_v13, %v1058_v14  ;;  %1186 = vadd.xlane.f32.xlu0 %v1185_v63  ;;  %v676_v53 = vpop.f32.mrb[69].mxu0 }
 0x216   : > { %v1188_v40 = vadd.f32 %v3209_v8, %v3203_v52  ;;  %v678_v31 = vpop.f32.mrb[70].mxu0 }
 0x217   : > { %2296 = vpow2.f32 %v1143_v20  ;;  %v1147_v17 = vmul.f32 1.442695, %v1093_v19  ;;  %v1149_v24 = vmul.f32 1.442695, %v1094_v15  ;;  %v680_v45 = vpop.f32.mrb[71].mxu0 }
 0x218   : > { %2298 = vpow2.f32 %v1145_v57  ;;  %1189 = vadd.xlane.f32.xlu1 %v1188_v40  ;;  %v3229_v20 = vpop.f32.mrb[72].mxu0  ;;  %v1282_v57 = vpack.c.bf16 %v680_v45, %v676_v53 }
 0x219   : > { %v3215_v62 = vpop.eup %2288  ;;  %2300 = vpow2.f32 %v1147_v17  ;;  %v686_v19 = vpop.f32.mrb[73].mxu0 }
 0x21a   : > { %v3217_v47 = vpop.eup %2290  ;;  %2302 = vpow2.f32 %v1149_v24  ;;  %v1061_v58 = vpop.xlane.xlu0 %1060  ;;  %1297 = vmatprep.subr.bf16.mxu1 %v1282_v57 }
 0x21b   : > { %v3219_v36 = vpop.eup %2292  ;;  %v1095_v13 = vsub.f32 %v3083_v34, %v1061_v58  ;;  %v1096_v59 = vsub.f32 %v3085_v60, %v1061_v58  ;;  %v1191_v26 = vadd.f32 %v3217_v47, %v3215_v62  ;;  %v1281_v60 = vpack.c.bf16 %v678_v31, %v674_v11  ;;  %v3233_v17 = vpop.f32.mrb[74].mxu0 }
 0x21c   : > { %v3225_v10 = vpop.eup %2294  ;;  %v1064_v12 = vpop.xlane.xlu1 %1063 }
 0x21d   : > { %v1151_v21 = vmul.f32 1.442695, %v1095_v13  ;;  %v1153_v39 = vmul.f32 1.442695, %v1096_v59  ;;  %v1097_v63 = vsub.f32 %v3091_v32, %v1064_v12  ;;  %v1098_v14 = vsub.f32 %v3095_v46, %v1064_v12  ;;  %1192 = vadd.xlane.f32.xlu0 %v1191_v26  ;;  %v690_v46 = vpop.f32.mrb[75].mxu0  ;;  %1298 = vmatpush1.bf16.xpose.msra.mxu1 %v1281_v60 }
 0x21e   : > { %v1194_v34 = vadd.f32 %v3225_v10, %v3219_v36  ;;  %v1284_v58 = vpack.c.bf16 %v690_v46, %v686_v19  ;;  %v3257_v19 = vpop.f32.mrb[76].mxu0 }
 0x21f   : > { %2304 = vpow2.f32 %v1151_v21  ;;  %v1155_v15 = vmul.f32 1.442695, %v1097_v63  ;;  %v1157_v40 = vmul.f32 1.442695, %v1098_v14 }
 0x220   : > { %2306 = vpow2.f32 %v1153_v39  ;;  %1195 = vadd.xlane.f32.xlu1 %v1194_v34  ;;  %1344 = vmatprep.subr.bf16.mxu1 %v1284_v58 }
 0x221   : > { %v3237_v24 = vpop.eup %2296  ;;  %2308 = vpow2.f32 %v1155_v15 }
 0x222   : > { %v3239_v11 = vpop.eup %2298  ;;  %2310 = vpow2.f32 %v1157_v40  ;;  %v1067_v53 = vpop.xlane.xlu0 %1066 }
 0x223   : > { %v3241_v13 = vpop.eup %2300  ;;  %v1099_v59 = vsub.f32 %v3099_v18, %v1067_v53  ;;  %v1100_v26 = vsub.f32 %v3101_v43, %v1067_v53  ;;  %v1197_v31 = vadd.f32 %v3239_v11, %v3237_v24 }
 0x224   : > { %v3247_v12 = vpop.eup %2302  ;;  %v1070_v45 = vpop.xlane.xlu1 %1069 }
 0x225   : > { %v1159_v21 = vmul.f32 1.442695, %v1099_v59  ;;  %v1161_v39 = vmul.f32 1.442695, %v1100_v26  ;;  %1198 = vadd.xlane.f32.xlu0 %v1197_v31  ;;  %v1101_v63 = vsub.f32 %v3103_v38, %v1070_v45  ;;  %v1102_v14 = vsub.f32 %v3107_v9, %v1070_v45  ;;  %v3263_v38 = vpop.f32.mrb[77].mxu0  ;;  %v3303_v26 = vpop.f32.mrb[0].mxu1 }
 0x226   : > { %v1200_v34 = vadd.f32 %v3247_v12, %v3241_v13  ;;  %v3267_v46 = vpop.f32.mrb[78].mxu0  ;;  %v3307_v28 = vpop.f32.mrb[1].mxu1 }
 0x227   : > { %2312 = vpow2.f32 %v1159_v21  ;;  %v1163_v18 = vmul.f32 1.442695, %v1101_v63  ;;  %v1165_v43 = vmul.f32 1.442695, %v1102_v14  ;;  %v3273_v59 = vpop.f32.mrb[79].mxu0  ;;  %v3311_v25 = vpop.f32.mrb[2].mxu1 }
 0x228   : > { %2314 = vpow2.f32 %v1161_v39  ;;  %1201 = vadd.xlane.f32.xlu1 %v1200_v34  ;;  %v3277_v31 = vpop.f32.mrb[80].mxu0  ;;  %v3319_v56 = vpop.f32.mrb[3].mxu1 }
 0x229   : > { %v3253_v60 = vpop.eup %2304  ;;  %2316 = vpow2.f32 %v1163_v18  ;;  %v3279_v45 = vpop.f32.mrb[81].mxu0 }
 0x22a   : > { %3619 = vst [vmem:[#allocation39_spill] sm:$0xff] %v3253_v60  ;;  %v3255_v57 = vpop.eup %2306  ;;  %2318 = vpow2.f32 %v1165_v43  ;;  %v3281_v21 = vpop.f32.mrb[82].mxu0 }
 0x22b   : > { %v3259_v15 = vpop.eup %2308  ;;  %v1203_v9 = vadd.f32 %v3255_v57, %v3253_v60  ;;  %v3287_v14 = vpop.f32.mrb[83].mxu0 }
 0x22c   : > { %v3265_v40 = vpop.eup %2310  ;;  %v3301_v63 = vpop.f32.mrb[84].mxu0 }
 0x22d   : > { %1204 = vadd.xlane.f32.xlu0 %v1203_v9  ;;  %v1206_v58 = vadd.f32 %v3265_v40, %v3259_v15  ;;  %v3305_v32 = vpop.f32.mrb[85].mxu0  ;;  %v3325_v1 = vpop.f32.mrb[4].mxu1 }
 0x22e   : > { %v3309_v18 = vpop.f32.mrb[86].mxu0  ;;  %v3327_v49 = vpop.f32.mrb[5].mxu1 }
 0x22f   : > { %1207 = vadd.xlane.f32.xlu1 %v1206_v58  ;;  %v3329_v37 = vpop.f32.mrb[6].mxu1 }
 0x230   : > { %v3333_v4 = vpop.f32.mrb[7].mxu1 }
 0x231   : > { %v3283_v39 = vpop.eup %2312 }
 0x232   : > { %3620 = vst [vmem:[#allocation40_spill] sm:$0xff] %v3283_v39  ;;  %v3289_v34 = vpop.eup %2314 }
 0x233   : > { %3621 = vst [vmem:[#allocation41_spill] sm:$0xff] %v3289_v34  ;;  %v3293_v43 = vpop.eup %2316  ;;  %v1209_v9 = vadd.f32 %v3289_v34, %v3283_v39 }
 0x234   : > { %3622 = vst [vmem:[#allocation42_spill] sm:$0xff] %v3293_v43  ;;  %v3297_v58 = vpop.eup %2318 }
 0x235   : > { %3623 = vst [vmem:[#allocation43_spill] sm:$0xff] %v3297_v58  ;;  %1210 = vadd.xlane.f32.xlu0 %v1209_v9  ;;  %v1212_v53 = vadd.f32 %v3297_v58, %v3293_v43  ;;  %v3315_v9 = vpop.f32.mrb[87].mxu0 }
 0x237   : > { %1213 = vadd.xlane.f32.xlu1 %v1212_v53 }
 0x28c   : > { %v1169_v39 = vpop.xlane.xlu0 %1168 }
 0x28d   : > { %2320 = vrcp.f32 %v1169_v39 }
 0x290   : > { %v1172_v7 = vpop.xlane.xlu1 %1171 }
 0x291   : > { %2322 = vrcp.f32 %v1172_v7 }
 0x292   : > { %v1175_v43 = vpop.xlane.xlu0 %1174 }
 0x293   : > { %2324 = vrcp.f32 %v1175_v43 }
 0x296   : > { %v1178_v22 = vpop.xlane.xlu1 %1177 }
 0x297   : > { %2326 = vrcp.f32 %v1178_v22  ;;  %v2321_v51 = vpop.eup %2320 }
 0x298   : > { %v1231_v23 = vmul.f32 %v2321_v51, %v3151_v27  ;;  %v1232_v6 = vmul.f32 %v2321_v51, %v3153_v33  ;;  %v3624_v51 = vpack.c.bf16 %v3233_v17, %v3229_v20  ;;  %v3627_v20 = vpack.c.bf16 %v3287_v14, %v3279_v45 }
 0x29b   : > { %v2323_v55 = vpop.eup %2322 }
 0x29c   : > { %v1233_v29 = vmul.f32 %v2323_v55, %v3159_v41  ;;  %v1234_v58 = vmul.f32 %v2323_v55, %v3163_v3 }
 0x29d   : > { %v1181_v34 = vpop.xlane.xlu0 %1180  ;;  %v2325_v53 = vpop.eup %2324 }
 0x29e   : > { %2328 = vrcp.f32 %v1181_v34  ;;  %v1264_v39 = vpack.c.bf16 %v1234_v58, %v1232_v6  ;;  %v1263_v60 = vpack.c.bf16 %v1233_v29, %v1231_v23  ;;  %v1236_v43 = vmul.f32 %v2325_v53, %v3169_v54 }
 0x29f   : > { %v1184_v7 = vpop.xlane.xlu1 %1183  ;;  %v3625_v23 = vpack.c.bf16 %v3273_v59, %v3263_v38  ;;  %v1235_v55 = vmul.f32 %v2325_v53, %v3165_v0 }
 0x2a0   : > { %2330 = vrcp.f32 %v1184_v7  ;;  %1327 = vmatprep.mubr.bf16.mxu1 %v1264_v39 }
 0x2a1   : > { %v2327_v35 = vpop.eup %2326  ;;  %1328 = vmatmul.mubr.bf16.vlgmr.msra.gmra.mrb[8].mxu1 %v1263_v60 }
 0x2a2   : > { %v1187_v22 = vpop.xlane.xlu0 %1186  ;;  %v1238_v27 = vmul.f32 %v2327_v35, %v3178_v5  ;;  %v1237_v41 = vmul.f32 %v2327_v35, %v3175_v2  ;;  %1345 = vmatpush1.bf16.xpose.msra.mxu1 %v3624_v51  ;;  %v3626_v2 = vpack.c.bf16 %v3267_v46, %v3257_v19 }
 0x2a3   : > { %2332 = vrcp.f32 %v1187_v22  ;;  %1346 = vmatprep.subr.bf16.mxu1 %v3625_v23 }
 0x2a4   : > { %v1266_v29 = vpack.c.bf16 %v1238_v27, %v1236_v43  ;;  %v1265_v33 = vpack.c.bf16 %v1237_v41, %v1235_v55  ;;  %v3631_v43 = vpack.c.bf16 %v3319_v56, %v3307_v28  ;;  %v3633_v28 = vpack.c.bf16 %v3333_v4, %v3327_v49 }
 0x2a5   : > { %v1190_v6 = vpop.xlane.xlu1 %1189  ;;  %v3634_v4 = vpack.c.bf16 %v3329_v37, %v3325_v1  ;;  %v3640_v37 = vld [vmem:[#allocation9_spill] sm:$0xff]  ;;  %v3641_v1 = vld [vmem:[#allocation8_spill] sm:$0xff] }
 0x2a6   : > { %2334 = vrcp.f32 %v1190_v6  ;;  %1335 = vmatprep.mubr.bf16.mxu1 %v1266_v29 }
 0x2a8   : > { %v2329_v3 = vpop.eup %2328 }
 0x2a9   : > { %1336 = vmatmul.mubr.bf16.gmra.mrb[12].mxu1 %v1265_v33  ;;  %v1240_v0 = vmul.f32 %v2329_v3, %v3189_v42  ;;  %v1239_v59 = vmul.f32 %v2329_v3, %v3185_v44  ;;  %v3628_v42 = vpack.c.bf16 %v3281_v21, %v3277_v31  ;;  %v3629_v44 = vpack.c.bf16 %v3315_v9, %v3305_v32  ;;  %v3637_v3 = vld [vmem:[#allocation39_spill] sm:$0xff] }
 0x2aa   : > { %v1193_v54 = vpop.xlane.xlu0 %1192  ;;  %v2331_v35 = vpop.eup %2330  ;;  %1347 = vmatpush1.bf16.xpose.msra.mxu1 %v3626_v2  ;;  %v3630_v32 = vpack.c.bf16 %v3309_v18, %v3301_v63  ;;  %v3638_v2 = vld [vmem:[#allocation41_spill] sm:$0xff] }
 0x2ab   : > { %v1241_v5 = vmul.f32 %v2331_v35, %v3191_v50  ;;  %2336 = vrcp.f32 %v1193_v54  ;;  %1393 = vmatprep.subr.bf16.mxu1 %v3627_v20  ;;  %v1242_v17 = vmul.f32 %v2331_v35, %v3195_v48 }
 0x2ad   : > { %v1196_v60 = vpop.xlane.xlu1 %1195  ;;  %v2333_v38 = vpop.eup %2332  ;;  %v1268_v34 = vpack.c.bf16 %v1242_v17, %v1240_v0  ;;  %v1267_v19 = vpack.c.bf16 %v1241_v5, %v1239_v59  ;;  %v3639_v5 = vld [vmem:[#allocation43_spill] sm:$0xff]  ;;  %v3642_v17 = vpack.c.bf16 %v3640_v37, %v3641_v1  ;;  %v3661_v1 = vld [vmem:[#allocation18_spill] sm:$0xff] }
 0x2ae   : > { %2338 = vrcp.f32 %v1196_v60  ;;  %v1244_v50 = vmul.f32 %v2333_v38, %v3201_v16  ;;  %v1243_v16 = vmul.f32 %v2333_v38, %v3197_v30  ;;  %v3644_v60 = vld [vmem:[#allocation12_spill] sm:$0xff]  ;;  %v3646_v38 = vld [vmem:[#allocation42_spill] sm:$0xff] }
 0x2af   : > { %1376 = vmatprep.mubr.bf16.mxu1 %v1268_v34  ;;  %v3647_v34 = vld [vmem:[#allocation40_spill] sm:$0xff] }
 0x2b0   : > { %v2335_v58 = vpop.eup %2334 }
 0x2b1   : > { %v1246_v46 = vmul.f32 %v2335_v58, %v3209_v8  ;;  %1377 = vmatmul.mubr.bf16.vlgmr.msra.gmra.mrb[16].mxu1 %v1267_v19  ;;  %v1245_v14 = vmul.f32 %v2335_v58, %v3203_v52  ;;  %v3648_v19 = vld [vmem:[#allocation14_spill] sm:$0xff] }
 0x2b2   : > { %v1199_v45 = vpop.xlane.xlu0 %1198  ;;  %1394 = vmatpush1.bf16.xpose.msra.mxu1 %v3628_v42  ;;  %v3652_v42 = vld [vmem:[#allocation19_spill] sm:$0xff] }
 0x2b3   : > { %v1270_v48 = vpack.c.bf16 %v1246_v46, %v1244_v50  ;;  %2340 = vrcp.f32 %v1199_v45  ;;  %1395 = vmatprep.subr.bf16.mxu1 %v3629_v44  ;;  %v1269_v7 = vpack.c.bf16 %v1245_v14, %v1243_v16  ;;  %v3649_v50 = vld [vmem:[#allocation10_spill] sm:$0xff]  ;;  %v3651_v45 = vld [vmem:[#allocation20_spill] sm:$0xff]  ;;  %v3654_v14 = vmov 0  }
 0x2b4   : > { %v3650_v46 = vpack.c.bf16 %v3648_v19, %v3649_v50  ;;  %v3668_v19 = vld [vmem:[#allocation23_spill] sm:$0xff] }
 0x2b5   : > { %v1202_v53 = vpop.xlane.xlu1 %1201  ;;  %1384 = vmatprep.mubr.bf16.mxu1 %v1270_v48  ;;  %v2337_v39 = vpop.eup %2336  ;;  %v3653_v48 = vpack.c.bf16 %v3651_v45, %v3652_v42  ;;  %v3671_v45 = vld [vmem:[#allocation29_spill] sm:$0xff] }
 0x2b6   : > { %2342 = vrcp.f32 %v1202_v53  ;;  %v1248_v22 = vmul.f32 %v2337_v39, %v3217_v47 }
 0x2b8   : > { %v2339_v8 = vpop.eup %2338 }
 0x2b9   : > { %v1250_v31 = vmul.f32 %v2339_v8, %v3225_v10  ;;  %1385 = vmatmul.mubr.bf16.gmra.mrb[20].mxu1 %v1269_v7  ;;  %v1249_v9 = vmul.f32 %v2339_v8, %v3219_v36  ;;  %v1247_v10 = vmul.f32 %v2337_v39, %v3215_v62  ;;  %v3632_v36 = vpack.c.bf16 %v3311_v25, %v3303_v26 }
 0x2ba   : > { %v1205_v21 = vpop.xlane.xlu0 %1204  ;;  %1396 = vmatpush1.bf16.xpose.msra.mxu1 %v3630_v32 }
 0x2bb   : > { %2344 = vrcp.f32 %v1205_v21  ;;  %v1272_v52 = vpack.c.bf16 %v1250_v31, %v1248_v22  ;;  %1442 = vmatprep.subr.bf16.mxu1 %v3631_v43  ;;  %v1271_v41 = vpack.c.bf16 %v1249_v9, %v1247_v10 }
 0x2bc   : > { %v1208_v30 = vpop.xlane.xlu1 %1207 }
 0x2bd   : > { %2346 = vrcp.f32 %v1208_v30  ;;  %1425 = vmatprep.mubr.bf16.mxu1 %v1272_v52  ;;  %v2341_v47 = vpop.eup %2340 }
 0x2be   : > { %v1252_v51 = vmul.f32 %v2341_v47, %v3239_v11  ;;  %v1251_v11 = vmul.f32 %v2341_v47, %v3237_v24 }
 0x2c0   : > { %v2343_v27 = vpop.eup %2342 }
 0x2c1   : > { %v1254_v63 = vmul.f32 %v2343_v27, %v3247_v12  ;;  %1426 = vmatmul.mubr.bf16.vlgmr.msra.gmra.mrb[24].mxu1 %v1271_v41  ;;  %v1253_v62 = vmul.f32 %v2343_v27, %v3241_v13  ;;  %v3635_v13 = vld [vmem:[#allocation11_spill] sm:$0xff] }
 0x2c2   : > { %v1211_v18 = vpop.xlane.xlu0 %1210  ;;  %1443 = vmatpush1.bf16.xpose.msra.mxu1 %v3632_v36  ;;  %v3636_v33 = vpack.c.bf16 %v2898_v61, %v3635_v13 }
 0x2c3   : > { %2348 = vrcp.f32 %v1211_v18  ;;  %v1274_v56 = vpack.c.bf16 %v1254_v63, %v1252_v51  ;;  %1444 = vmatprep.subr.bf16.mxu1 %v3633_v28  ;;  %v1273_v55 = vpack.c.bf16 %v1253_v62, %v1251_v11 }
 0x2c4   : > { %v1214_v23 = vpop.xlane.xlu1 %1213 }
 0x2c5   : > { %v2345_v29 = vpop.eup %2344  ;;  %2350 = vrcp.f32 %v1214_v23  ;;  %1433 = vmatprep.mubr.bf16.mxu1 %v1274_v56 }
 0x2c6   : > { %v1256_v6 = vmul.f32 %v2345_v29, %v3255_v57  ;;  %v1255_v54 = vmul.f32 %v2345_v29, %v3637_v3 }
 0x2c7   : > { %v2347_v12 = vpop.eup %2346 }
 0x2c8   : > { %v1258_v25 = vmul.f32 %v2347_v12, %v3265_v40  ;;  %v1257_v49 = vmul.f32 %v2347_v12, %v3259_v15  ;;  %v3643_v15 = vld [vmem:[#allocation13_spill] sm:$0xff] }
 0x2c9   : > { %1434 = vmatmul.mubr.bf16.gmra.mrb[28].mxu1 %v1273_v55  ;;  %v3645_v61 = vpack.c.bf16 %v3643_v15, %v3644_v60 }
 0x2ca   : > { %v1276_v26 = vpack.c.bf16 %v1258_v25, %v1256_v6  ;;  %1445 = vmatpush1.bf16.xpose.msra.mxu1 %v3634_v4  ;;  %v1275_v57 = vpack.c.bf16 %v1257_v49, %v1255_v54 }
 0x2cb   : > { %1537 = vmatprep.subr.bf16.mxu1 %v3636_v33 }
 0x2cc   : > { %1474 = vmatprep.mubr.bf16.mxu1 %v1276_v26 }
 0x2cd   : > { %v2349_v24 = vpop.eup %2348 }
 0x2ce   : > { %v1260_v40 = vmul.f32 %v2349_v24, %v3638_v2  ;;  %v1259_v58 = vmul.f32 %v2349_v24, %v3647_v34  ;;  %v3655_v2 = vld [vmem:[#allocation16_spill] sm:$0xff] }
 0x2cf   : > { %v2351_v35 = vpop.eup %2350 }
 0x2d0   : > { %v1262_v20 = vmul.f32 %v2351_v35, %v3639_v5  ;;  %v1261_v59 = vmul.f32 %v2351_v35, %v3646_v38  ;;  %v3665_v38 = vld [vmem:[#allocation27_spill] sm:$0xff] }
 0x2d1   : > { %1475 = vmatmul.mubr.bf16.vlgmr.msra.gmra.mrb[32].mxu1 %v1275_v57 }
 0x2d2   : > { %v1278_v0 = vpack.c.bf16 %v1262_v20, %v1260_v40  ;;  %1538 = vmatpush1.bf16.msra.mxu1 %v3642_v17  ;;  %v1277_v44 = vpack.c.bf16 %v1261_v59, %v1259_v58  ;;  %v3656_v40 = vld [vmem:[#allocation15_spill] sm:$0xff]  ;;  %v3658_v20 = vld [vmem:[#allocation22_spill] sm:$0xff]  ;;  %v3662_v17 = vld [vmem:[#allocation17_spill] sm:$0xff] }
 0x2d3   : > { %1539 = vmatprep.subr.bf16.mxu1 %v3645_v61  ;;  %v3657_v5 = vpack.c.bf16 %v3655_v2, %v3656_v40  ;;  %v3663_v15 = vpack.c.bf16 %v3661_v1, %v3662_v17  ;;  %v3664_v61 = vld [vmem:[#allocation28_spill] sm:$0xff] }
 0x2d4   : > { %1482 = vmatprep.mubr.bf16.mxu1 %v1278_v0  ;;  %v3659_v0 = vld [vmem:[#allocation21_spill] sm:$0xff]  ;;  %v3666_v59 = vpack.c.bf16 %v3664_v61, %v3665_v38  ;;  %v3667_v58 = vld [vmem:[#allocation24_spill] sm:$0xff] }
 0x2d5   : > { %v3660_v37 = vpack.c.bf16 %v3658_v20, %v3659_v0  ;;  %v3669_v50 = vpack.c.bf16 %v3667_v58, %v3668_v19 }
 0x2d6   : > { %1540 = vmatpush1.bf16.msra.mxu1 %v3650_v46  ;;  %v3670_v46 = vld [vmem:[#allocation30_spill] sm:$0xff] }
 0x2d7   : > { %1612 = vmatprep.subr.bf16.mxu1 %v3653_v48  ;;  %v3672_v42 = vpack.c.bf16 %v3670_v46, %v3671_v45  ;;  %v3673_v48 = vld [vmem:[#allocation26_spill] sm:$0xff] }
 0x2d9   : > { %1483 = vmatmul.mubr.bf16.gmra.mrb[36].mxu1 %v1277_v44  ;;  %v3674_v44 = vld [vmem:[#allocation25_spill] sm:$0xff] }
 0x2da   : > { %1569 = vmatprep.mubr.bf16.mxu1 %v3654_v14 }
 0x374   : > { %v1329_v53 = vpop.f32.mrb[8].mxu1 }
 0x375   : > { %v1331_v39 = vpop.f32.mrb[9].mxu1 }
 0x376   : > { %v1332_v16 = vpop.f32.mrb[10].mxu1 }
 0x377   : > { %v1491_v8 = vpack.c.bf16 %v1332_v16, %v1329_v53  ;;  %v1334_v7 = vpop.f32.mrb[11].mxu1  ;;  %v3675_v53 = vpack.c.bf16 %v3673_v48, %v3674_v44  ;;  %v3676_v16 = vld [vmem:[#allocation36_spill] sm:$0xff] }
 0x379   : > { %1515 = vxpose.xlu0.c.b16.start [1/2] (short) (narrow) %v1491_v8, 32  ;;  %v3677_v8 = vld [vmem:[#allocation35_spill] sm:$0xff] }
 0x37a   : > { %v3678_v7 = vpack.c.bf16 %v3676_v16, %v3677_v8 }
 0x37c   : > { %v1337_v22 = vpop.f32.mrb[12].mxu1 }
 0x37d   : > { %v1339_v31 = vpop.f32.mrb[13].mxu1 }
 0x37e   : > { %v1340_v21 = vpop.f32.mrb[14].mxu1  ;;  %v3679_v31 = vld [vmem:[#allocation32_spill] sm:$0xff] }
 0x37f   : > { %v1492_v32 = vpack.c.bf16 %v1340_v21, %v1337_v22  ;;  %v1342_v52 = vpop.f32.mrb[15].mxu1  ;;  %v3680_v21 = vld [vmem:[#allocation31_spill] sm:$0xff] }
 0x380   : > { %v3682_v52 = vld [vmem:[#allocation38_spill] sm:$0xff] }
 0x381   : > { %1516 = vxpose.xlu0.c.b16.end [2/2] (short) (narrow) %v1492_v32, 32  ;;  %v3681_v32 = vpack.c.bf16 %v3679_v31, %v3680_v21  ;;  %v2174_v21 = vld [vmem:[%s3541_s2] sm:$0xff]  }
 0x384   : > { %v1378_v9 = vpop.f32.mrb[16].mxu1 }
 0x385   : > { %v1380_v43 = vpop.f32.mrb[17].mxu1 }
 0x386   : > { %v1381_v30 = vpop.f32.mrb[18].mxu1 }
 0x387   : > { %v1493_v47 = vpack.c.bf16 %v1381_v30, %v1378_v9  ;;  %v1383_v10 = vpop.f32.mrb[19].mxu1  ;;  %v3683_v9 = vld [vmem:[#allocation37_spill] sm:$0xff]  ;;  %v3685_v30 = vld [vmem:[#allocation34_spill] sm:$0xff] }
 0x388   : > { %v3684_v43 = vpack.c.bf16 %v3682_v52, %v3683_v9 }
 0x389   : > { %1590 = vxpose.xlu1.c.b16.start [1/2] (short) (narrow) %v1493_v47, 32  ;;  %v3686_v47 = vld [vmem:[#allocation33_spill] sm:$0xff] }
 0x38a   : > { %v3687_v10 = vpack.c.bf16 %v3685_v30, %v3686_v47 }
 0x38c   : > { %v1386_v27 = vpop.f32.mrb[20].mxu1 }
 0x38d   : > { %v1388_v41 = vpop.f32.mrb[21].mxu1 }
 0x38e   : > { %v1389_v51 = vpop.f32.mrb[22].mxu1 }
 0x38f   : > { %v1494_v63 = vpack.c.bf16 %v1389_v51, %v1386_v27  ;;  %v1391_v18 = vpop.f32.mrb[23].mxu1 }
 0x390   : > { %v1835_v18 = vld [vmem:[%s3542_s3] sm:$0xff] }
 0x391   : > { %1591 = vxpose.xlu1.c.b16.end [2/2] (short) (narrow) %v1494_v63, 32  ;;  %v1836_v63 = vld [vmem:[%s3542_s3 + $0x8] sm:$0xff] }
 0x394   : > { %v1427_v36 = vpop.f32.mrb[24].mxu1 }
 0x395   : > { %v1429_v56 = vpop.f32.mrb[25].mxu1 }
 0x396   : > { %v1430_v28 = vpop.f32.mrb[26].mxu1  ;;  %v1838_v56 = vld [vmem:[%s3542_s3 + $0x18] sm:$0xff] }
 0x397   : > { %v1495_v23 = vpack.c.bf16 %v1430_v28, %v1427_v36  ;;  %v1432_v62 = vpop.f32.mrb[27].mxu1  ;;  %v1837_v36 = vld [vmem:[%s3542_s3 + $0x10] sm:$0xff] }
 0x399   : > { %1665 = vxpose.xlu0.c.b16.start [1/2] (short) (narrow) %v1495_v23, 32 }
 0x39c   : > { %v1435_v29 = vpop.f32.mrb[28].mxu1 }
 0x39d   : > { %v1437_v11 = vpop.f32.mrb[29].mxu1 }
 0x39e   : > { %v1438_v12 = vpop.f32.mrb[30].mxu1 }
 0x39f   : > { %v1496_v55 = vpack.c.bf16 %v1438_v12, %v1435_v29  ;;  %v1440_v6 = vpop.f32.mrb[31].mxu1 }
 0x3a1   : > { %1666 = vxpose.xlu0.c.b16.end [2/2] (short) (narrow) %v1496_v55, 32 }
 0x3a4   : > { %v1476_v25 = vpop.f32.mrb[32].mxu1 }
 0x3a5   : > { %v1478_v26 = vpop.f32.mrb[33].mxu1 }
 0x3a6   : > { %v1479_v4 = vpop.f32.mrb[34].mxu1 }
 0x3a7   : > { %v1497_v49 = vpack.c.bf16 %v1479_v4, %v1476_v25  ;;  %v1481_v13 = vpop.f32.mrb[35].mxu1 }
 0x3a9   : > { %1740 = vxpose.xlu1.c.b16.start [1/2] (short) (narrow) %v1497_v49, 32 }
 0x3aa   : > { %2148 = vset.pattern.permute.xlu0 %v3654_v14 }
 0x3ab   : > { %1841 = vperm.xlu0 %2148, %v1835_v18  }
 0x3ac   : > { %v1484_v33 = vpop.f32.mrb[36].mxu1 }
 0x3ad   : > { %v1486_v24 = vpop.f32.mrb[37].mxu1 }
 0x3ae   : > { %v1487_v3 = vpop.f32.mrb[38].mxu1 }
 0x3af   : > { %v1498_v54 = vpack.c.bf16 %v1487_v3, %v1484_v33  ;;  %v1489_v35 = vpop.f32.mrb[39].mxu1 }
 0x3b1   : > { %1741 = vxpose.xlu1.c.b16.end [2/2] (short) (narrow) %v1498_v54, 32 }
 0x3b5   : > { %2149 = vset.pattern.permute.xlu1 %v3654_v14 }
 0x3b6   : > { %1846 = vperm.xlu1 %2149, %v1836_v63  }
 0x3ba   : > { %1851 = vperm.xlu1 %2149, %v1837_v36  }
 0x3be   : > { %1856 = vperm.xlu1 %2149, %v1838_v56  }
 0x3e3   : > { %v1523_v57 = vpop.trf.xlu0 }
 0x3e4   : > { %2076 = vmatmul.mubr.msk.bf16.vlgmr.msra.gmra.mrb[40].mxu1 %vm397_vm0, %v1523_v57 }
 0x3e5   : > { %1613 = vmatpush1.bf16.msra.mxu1 %v3657_v5  ;;  %1579 = vmatprep.mubr.bf16.mxu1 %v3654_v14 }
 0x3e6   : > { %1614 = vmatprep.subr.bf16.mxu1 %v3660_v37 }
 0x3e7   : > { %v1524_v60 = vpop.trf.xlu0 }
 0x3e9   : > { %1615 = vmatpush1.bf16.msra.mxu1 %v3663_v15 }
 0x3ea   : > { %1687 = vmatprep.subr.bf16.mxu1 %v3666_v59 }
 0x3ec   : > { %2077 = vmatmul.mubr.msk.bf16.gmra.mrb[44].mxu1 %vm397_vm0, %v1524_v60 }
 0x3ed   : > { %1644 = vmatprep.mubr.bf16.mxu1 %v3654_v14 }
 0x3f3   : > { %v1598_v34 = vpop.trf.xlu1 }
 0x3f4   : > { %2078 = vmatmul.mubr.msk.bf16.vlgmr.msra.gmra.mrb[48].mxu1 %vm397_vm0, %v1598_v34 }
 0x3f5   : > { %1688 = vmatpush1.bf16.msra.mxu1 %v3669_v50  ;;  %1654 = vmatprep.mubr.bf16.mxu1 %v3654_v14 }
 0x3f6   : > { %1689 = vmatprep.subr.bf16.mxu1 %v3672_v42 }
 0x3f7   : > { %v1599_v39 = vpop.trf.xlu1 }
 0x3f9   : > { %1690 = vmatpush1.bf16.msra.mxu1 %v3675_v53 }
 0x3fa   : > { %1762 = vmatprep.subr.bf16.mxu1 %v3678_v7 }
 0x3fc   : > { %2079 = vmatmul.mubr.msk.bf16.gmra.mrb[52].mxu1 %vm397_vm0, %v1599_v39 }
 0x3fd   : > { %1719 = vmatprep.mubr.bf16.mxu1 %v3654_v14 }
 0x403   : > { %v1673_v22 = vpop.trf.xlu0 }
 0x404   : > { %2080 = vmatmul.mubr.msk.bf16.vlgmr.msra.gmra.mrb[56].mxu1 %vm397_vm0, %v1673_v22 }
 0x405   : > { %1763 = vmatpush1.bf16.msra.mxu1 %v3681_v32  ;;  %1729 = vmatprep.mubr.bf16.mxu1 %v3654_v14  ;;  %v2175_v32 = vld [vmem:[%s3541_s2 + $0x8] sm:$0xff]  }
 0x406   : > { %1764 = vmatprep.subr.bf16.mxu1 %v3684_v43 }
 0x407   : > { %v1674_v27 = vpop.trf.xlu0 }
 0x409   : > { %1765 = vmatpush1.bf16.msra.mxu1 %v3687_v10 }
 0x40c   : > { %2081 = vmatmul.mubr.msk.bf16.gmra.mrb[60].mxu1 %vm397_vm0, %v1674_v27 }
 0x40d   : > { %1794 = vmatprep.mubr.bf16.mxu1 %v3654_v14 }
 0x413   : > { %v1748_v41 = vpop.trf.xlu1 }
 0x414   : > { %2082 = vmatmul.mubr.msk.bf16.vlgmr.msra.gmra.mrb[64].mxu1 %vm397_vm0, %v1748_v41 }
 0x415   : > { %1804 = vmatprep.mubr.bf16.mxu1 %v3654_v14 }
 0x417   : > { %v1749_v51 = vpop.trf.xlu1 }
 0x41c   : > { %2083 = vmatmul.mubr.msk.bf16.gmra.mrb[68].mxu1 %vm397_vm0, %v1749_v51 }
 0x41d   : > { %1903 = vmatprep.mubr.bf16.mxu1 %v3654_v14 }
 0x42a   : > { %v1842_v9 = vpop.permute.xlu0 %1841 }
 0x435   : > { %v1847_v52 = vpop.permute.xlu1 %1846 }
 0x439   : > { %v1852_v63 = vpop.permute.xlu1 %1851 }
 0x4b7   : > { %v1571_v28 = vpop.f32.mrb[40].mxu1 }
 0x4b8   : > { %v1573_v23 = vpop.f32.mrb[41].mxu1 }
 0x4b9   : > { %v1575_v62 = vpop.f32.mrb[42].mxu1 }
 0x4ba   : > { %v1815_v29 = vpack.c.bf16 %v1575_v62, %v1571_v28  ;;  %v1577_v11 = vpop.f32.mrb[43].mxu1  ;;  %v1857_v28 = vpop.permute.xlu1 %1856 }
 0x4bb   : > { %v1816_v12 = vpack.c.bf16 %v1577_v11, %v1573_v23 }
 0x4bd   : > { %1871 = vmatprep.subr.bf16.mxu1 %v1816_v12 }
 0x4be   : > { %1872 = vmatpush1.bf16.msra.mxu1 %v1815_v29 }
 0x4bf   : > { %v1581_v55 = vpop.f32.mrb[44].mxu1 }
 0x4c0   : > { %v1583_v6 = vpop.f32.mrb[45].mxu1 }
 0x4c1   : > { %v1585_v25 = vpop.f32.mrb[46].mxu1 }
 0x4c2   : > { %v1817_v26 = vpack.c.bf16 %v1585_v25, %v1581_v55  ;;  %v1587_v4 = vpop.f32.mrb[47].mxu1 }
 0x4c3   : > { %v1818_v49 = vpack.c.bf16 %v1587_v4, %v1583_v6 }
 0x4c5   : > { %1873 = vmatprep.subr.bf16.mxu1 %v1818_v49 }
 0x4c6   : > { %1874 = vmatpush1.bf16.msra.mxu1 %v1817_v26 }
 0x4c7   : > { %v1646_v13 = vpop.f32.mrb[48].mxu1 }
 0x4c8   : > { %v1648_v33 = vpop.f32.mrb[49].mxu1 }
 0x4c9   : > { %v1650_v24 = vpop.f32.mrb[50].mxu1 }
 0x4ca   : > { %v1819_v3 = vpack.c.bf16 %v1650_v24, %v1646_v13  ;;  %v1652_v54 = vpop.f32.mrb[51].mxu1 }
 0x4cb   : > { %v1820_v35 = vpack.c.bf16 %v1652_v54, %v1648_v33 }
 0x4cd   : > { %1875 = vmatprep.subr.bf16.mxu1 %v1820_v35 }
 0x4ce   : > { %1876 = vmatpush1.bf16.msra.mxu1 %v1819_v3 }
 0x4cf   : > { %v1656_v57 = vpop.f32.mrb[52].mxu1 }
 0x4d0   : > { %v1658_v2 = vpop.f32.mrb[53].mxu1 }
 0x4d1   : > { %v1660_v40 = vpop.f32.mrb[54].mxu1 }
 0x4d2   : > { %v1821_v5 = vpack.c.bf16 %v1660_v40, %v1656_v57  ;;  %v1662_v20 = vpop.f32.mrb[55].mxu1 }
 0x4d3   : > { %v1822_v0 = vpack.c.bf16 %v1662_v20, %v1658_v2 }
 0x4d5   : > { %1877 = vmatprep.subr.bf16.mxu1 %v1822_v0 }
 0x4d6   : > { %1878 = vmatpush1.bf16.msra.mxu1 %v1821_v5 }
 0x4d7   : > { %v1721_v37 = vpop.f32.mrb[56].mxu1 }
 0x4d8   : > { %v1723_v1 = vpop.f32.mrb[57].mxu1 }
 0x4d9   : > { %v1725_v17 = vpop.f32.mrb[58].mxu1 }
 0x4da   : > { %v1823_v15 = vpack.c.bf16 %v1725_v17, %v1721_v37  ;;  %v1727_v60 = vpop.f32.mrb[59].mxu1 }
 0x4db   : > { %v1824_v61 = vpack.c.bf16 %v1727_v60, %v1723_v1 }
 0x4dd   : > { %1879 = vmatprep.subr.bf16.mxu1 %v1824_v61 }
 0x4de   : > { %1880 = vmatpush1.bf16.msra.mxu1 %v1823_v15 }
 0x4df   : > { %v1731_v38 = vpop.f32.mrb[60].mxu1 }
 0x4e0   : > { %v1733_v59 = vpop.f32.mrb[61].mxu1 }
 0x4e1   : > { %v1735_v34 = vpop.f32.mrb[62].mxu1 }
 0x4e2   : > { %v1825_v58 = vpack.c.bf16 %v1735_v34, %v1731_v38  ;;  %v1737_v19 = vpop.f32.mrb[63].mxu1 }
 0x4e3   : > { %v1826_v50 = vpack.c.bf16 %v1737_v19, %v1733_v59 }
 0x4e5   : > { %1881 = vmatprep.subr.bf16.mxu1 %v1826_v50 }
 0x4e6   : > { %1882 = vmatpush1.bf16.msra.mxu1 %v1825_v58 }
 0x4e7   : > { %v1796_v46 = vpop.f32.mrb[64].mxu1 }
 0x4e8   : > { %v1798_v45 = vpop.f32.mrb[65].mxu1 }
 0x4e9   : > { %v1800_v42 = vpop.f32.mrb[66].mxu1 }
 0x4ea   : > { %v1827_v48 = vpack.c.bf16 %v1800_v42, %v1796_v46  ;;  %v1802_v44 = vpop.f32.mrb[67].mxu1 }
 0x4eb   : > { %v1828_v53 = vpack.c.bf16 %v1802_v44, %v1798_v45 }
 0x4ed   : > { %1883 = vmatprep.subr.bf16.mxu1 %v1828_v53 }
 0x4ee   : > { %1884 = vmatpush1.bf16.msra.mxu1 %v1827_v48 }
 0x4ef   : > { %v1806_v39 = vpop.f32.mrb[68].mxu1 }
 0x4f0   : > { %v1808_v16 = vpop.f32.mrb[69].mxu1 }
 0x4f1   : > { %v1810_v8 = vpop.f32.mrb[70].mxu1 }
 0x4f2   : > { %v1829_v7 = vpack.c.bf16 %v1810_v8, %v1806_v39  ;;  %v1812_v22 = vpop.f32.mrb[71].mxu1 }
 0x4f3   : > { %v1830_v31 = vpack.c.bf16 %v1812_v22, %v1808_v16 }
 0x4f5   : > { %1885 = vmatprep.subr.bf16.mxu1 %v1830_v31 }
 0x4f6   : > { %1886 = vmatpush1.bf16.msra.mxu1 %v1829_v7 }
 0x4f9   : > { %1904 = vmatmul.mubr.bf16.vlgmr.msra.gmra.mrb[72].mxu1 %v2174_v21 }
 0x4fa   : > { %1913 = vmatprep.mubr.bf16.mxu1 %v3654_v14 }
 0x501   : > { %1914 = vmatmul.mubr.bf16.gmra.mrb[76].mxu1 %v2175_v32 }
 0x5cc   : > { %v1905_v43 = vpop.f32.mrb[72].mxu1 }
 0x5cd   : > { %v1906_v30 = vadd.f32 %v1905_v43, %v1842_v9  ;;  %v1907_v47 = vpop.f32.mrb[73].mxu1 }
 0x5ce   : > { %v1908_v10 = vadd.f32 %v1907_v47, %v1842_v9  ;;  %v1909_v27 = vpop.f32.mrb[74].mxu1 }
 0x5cf   : > { %1924 = vst [vmem:[%s215_s26] sm:$0xff] %v1906_v30  ;;  %v1910_v41 = vadd.f32 %v1909_v27, %v1847_v52  ;;  %v1911_v51 = vpop.f32.mrb[75].mxu1 }
 0x5d0   : > { %1925 = vst [vmem:[%s215_s26 + $0x8] sm:$0xff] %v1908_v10  ;;  %v1912_v14 = vadd.f32 %v1911_v51, %v1847_v52 }
 0x5d1   : > { %1926 = vst [vmem:[%s215_s26 + $0x10] sm:$0xff] %v1910_v41 }
 0x5d2   : > { %1927 = vst [vmem:[%s215_s26 + $0x18] sm:$0xff] %v1912_v14 }
 0x5d4   : > { %v1915_v18 = vpop.f32.mrb[76].mxu1 }
 0x5d5   : > { %v1916_v36 = vadd.f32 %v1915_v18, %v1852_v63  ;;  %v1917_v56 = vpop.f32.mrb[77].mxu1 }
 0x5d6   : > { %v1918_v23 = vadd.f32 %v1917_v56, %v1852_v63  ;;  %v1919_v62 = vpop.f32.mrb[78].mxu1 }
 0x5d7   : > { %1928 = vst [vmem:[%s215_s26 + $0x20] sm:$0xff] %v1916_v36  ;;  %v1920_v29 = vadd.f32 %v1919_v62, %v1857_v28  ;;  %v1921_v11 = vpop.f32.mrb[79].mxu1 }
 0x5d8   : > { %1929 = vst [vmem:[%s215_s26 + $0x28] sm:$0xff] %v1918_v23  ;;  %v1922_v12 = vadd.f32 %v1921_v11, %v1857_v28 }
 0x5d9   : > { %1930 = vst [vmem:[%s215_s26 + $0x30] sm:$0xff] %v1920_v29 }
 0x5da   : > { %1931 = vst [vmem:[%s215_s26 + $0x38] sm:$0xff] %v1922_v12 }
 0x5db   : > { %2395 = shalt.err (!%p2392_p1)
}
 0x5dc   : > { %s2396_s5 = scalar_lea.hbm %s3496_s12, 1024  ;;  %s2400_s9 = scalar_lea.hbm %s3543_s4, 8192 }
 0x5dd   : > { %p2397_p3 = scmp.ne.s32.totalorder %s3496_s12, %s2396_s5  ;;  %p2401_p0 = scmp.lt.u32.totalorder %s3496_s12, %s3543_s4 }
 0x5de   : > { %p2402_p2 = scmp.lt.u32.totalorder %s2400_s9, %s2396_s5  ;;  %p2404_p6 = scmp.lt.u32.totalorder %s2396_s5, %s3496_s12 }
 0x5df   : > { %p2398_p4 = pnand %p2397_p3, %p3688_p10 }
 0x5e0   : > { %p2403_p7 = por %p2402_p2, %p2401_p0 }
 0x5e1   : > { %p2399_p5 = pneg %p2398_p4 }
 0x5e2   : > { %p2405_p11 = por %p2404_p6, %p2403_p7 }
 0x5e4   : > { %p2406_p12 = pnand %p2405_p11, %p2399_p5 }
 0x5e6   : > { %2409 = shalt.err (!%p2406_p12)
}
 0x5e7   : > { %s2455_s26 = smov 256   ;;  %s2456_s10 = smov 16  }
 0x5e8   : > { %2099 = dma.vmem_to_hbm [thread:$0]  (%p3688_p10), %s3491_s8, 1024, %s3496_s12, %s1933_s19, %s2455_s26, %s2455_s26, %s2456_s10  }
 0x5e9 PF: > { %p2110_p8 = scmp.ge.s32.totalorder %s2448_s18, 2  ;;  %s1961_s14 = sand.u32 1, %s2436_s15  }
 0x5ea   : > { %p3689_p9 = scmp.ne.s32.totalorder %s3586_s28, 0  ;;  %s1962_s11 = scalar_lea.sflag [#allocation4], %s1961_s14 }
 0x5ec   : > { %p2106_p13 = pnand %p2110_p8, %p3689_p9 }
 0x5ee   : > { %2431 = dma.done.wait (!%p2106_p13), %s1962_s11, 1024  }
 0x5ef   : > { %2433 = vsyncadd (!%p2106_p13), %s1962_s11, 4294966272  ;;  %p17_p1 = scmp.ge.s32.totalorder %s2507_s21, 10   ;;  %s3690_s15 = smov %s2440_s16 }
 0x5f0   : > { %s3691_s16 = smov %s2444_s17  ;;  %s3692_s17 = smov %s2519_s24 }
 0x5f1   : > { %s3693_s18 = smov %s2507_s21  ;;  %19 = sbr.rel (!%p17_p1) target bundleno = 5 (0x5), region = 81 }
 0x5f8   :  { %1967 = vsyncpa [#allocation3], 1 }
 0x5f9   :  { %1969 = vsyncpa [#allocation3 + $0x1], 1 }
 0x5fa   :  { %1970 = vsyncpa [#allocation4], 1 }
 0x5fb   :  { %1972 = vsyncpa [#allocation4 + $0x1], 1 }

</bundles_post_ra>
